<compile_context>
chip_gen: v7x
topology: tpu7x:2x2x1
jax: 0.10.0
libtpu: 0.0.40
codegen_flags: <defaults>
</compile_context>

<pallas_src>
import functools
import math

import jax
import jax.numpy as jnp
from jax import lax
from jax.experimental import pallas as pl
from jax.experimental.pallas import tpu as pltpu


def _attn_kernel(x_ref, wq_ref, wk_ref, wv_ref, bq_ref, bk_ref, bv_ref,
                 wp_ref, bp_ref, o_ref,
                 q_buf, k_buf, v_buf, y_buf,
                 *, n_head, tq, tk):
    # x_ref:   (1, T, C)   current batch row (native dtype)
    # wq/wk/wv:(C, C)      resident projection weights, [in, out] layout
    # bq/bk/bv:(1, C)      biases
    # wp_ref:  (C, C)      output-projection weight
    # bp_ref:  (1, C)      output-projection bias
    # o_ref:   (1, tq, C)  output tile for this (b, q_tile)
    # q_buf/k_buf/v_buf: (T, C) VMEM scratch, persistent across q tiles
    # y_buf:   (tq, C)     per-head attention outputs, fed to one full proj
    T, C = x_ref.shape[1], x_ref.shape[2]
    hs = C // n_head
    scale = 1.0 / math.sqrt(hs)
    dtype = x_ref.dtype
    q_idx = pl.program_id(1)

    # ---- Q/K/V projections: once per batch row (q_idx == 0) ----------------
    # Three separate full-width (T,C)x(C,C) dots: MXU N dim stays full and the
    # f32 temporary is (T,C), i.e. 1/3 of a fused (T,3C) temp.
    @pl.when(q_idx == 0)
    def _():
        x_row = x_ref[0]                                          # (T, C)
        q = jnp.dot(x_row, wq_ref[...], preferred_element_type=jnp.float32)
        q = (q + bq_ref[...].astype(jnp.float32)) * scale         # fold scale into q
        q_buf[...] = q.astype(q_buf.dtype)
        k = jnp.dot(x_row, wk_ref[...], preferred_element_type=jnp.float32)
        k_buf[...] = (k + bk_ref[...].astype(jnp.float32)).astype(k_buf.dtype)
        v = jnp.dot(x_row, wv_ref[...], preferred_element_type=jnp.float32)
        v_buf[...] = (v + bv_ref[...].astype(jnp.float32)).astype(v_buf.dtype)

    # ---- flash-style causal attention for this query tile ------------------
    q_start = pl.multiple_of(q_idx * tq, tq)
    q_all = q_buf[pl.ds(q_start, tq), :]                          # (tq, C), pre-scaled
    row_ids = q_idx * tq + lax.broadcasted_iota(jnp.int32, (tq, tk), 0)
    neg_big = jnp.float32(-1e30)
    n_kv = q_idx + 1              # causal: KV blocks > q block are fully masked -> skipped

    for h in range(n_head):       # n_head is a small compile-time constant
        qh = q_all[:, h * hs:(h + 1) * hs]                        # (tq, hs)
        # TODO(synk): for production hs < 128 these lane slices are not
        # 128-aligned for odd h; reorder W_qkv columns / process 2 heads per
        # 128-lane group if relayouts show up in the bundle dump.

        def kv_step(kv, carry):
            m_i, l_i, acc = carry
            kv_start = pl.multiple_of(kv * tk, tk)
            k_blk = k_buf[pl.ds(kv_start, tk), pl.ds(h * hs, hs)]  # (tk, hs)
            v_blk = v_buf[pl.ds(kv_start, tk), pl.ds(h * hs, hs)]  # (tk, hs)
            s = lax.dot_general(qh, k_blk, (((1,), (1,)), ((), ())),
                                preferred_element_type=jnp.float32)  # (tq, tk)
            col_ids = kv * tk + lax.broadcasted_iota(jnp.int32, (tq, tk), 1)
            s = jnp.where(row_ids >= col_ids, s, neg_big)
            m_new = jnp.maximum(m_i, jnp.max(s, axis=-1, keepdims=True))
            alpha = jnp.exp(m_i - m_new)                           # EUP
            p = jnp.exp(s - m_new)                                 # EUP
            l_new = alpha * l_i + jnp.sum(p, axis=-1, keepdims=True)
            acc_new = alpha * acc + jnp.dot(p.astype(dtype), v_blk,
                                            preferred_element_type=jnp.float32)
            return m_new, l_new, acc_new

        carry0 = (jnp.full((tq, 1), -1e30, jnp.float32),
                  jnp.zeros((tq, 1), jnp.float32),
                  jnp.zeros((tq, hs), jnp.float32))
        m_i, l_i, acc = lax.fori_loop(0, n_kv, kv_step, carry0)

        yh = acc * pl.reciprocal(l_i, approx=True)                 # EUP vrcp
        y_buf[:, pl.ds(h * hs, hs)] = yh.astype(y_buf.dtype)

    # ---- single full-width output projection (contraction K = C) -----------
    out = jnp.dot(y_buf[...], wp_ref[...], preferred_element_type=jnp.float32)
    out = out + bp_ref[...].astype(jnp.float32)
    # TODO(synk): attn_dropout / resid_dropout are identity at dropout=0.0
    # (eval); training dropout would need pltpu.prng_seed + prng_random_bits.
    o_ref[0] = out.astype(o_ref.dtype)


def causal_self_attention_pallas(x, w_qkv, b_qkv, w_proj, b_proj, *, n_head,
                                 tq=None):
    """x: (B, T, C).  w_qkv: (C, 3C), b_qkv: (3C,), w_proj: (C, C), b_proj: (C,).

    Weights stored [in_features, out_features] (transposed vs torch nn.Linear).
    """
    B, T, C = x.shape
    assert C % n_head == 0
    hs = C // n_head

    if tq is None:
        tq = 128 if T % 128 == 0 else T
    assert T % tq == 0 and (tq % 8 == 0 or tq == T)
    tk = tq
    n_q = T // tq

    # Split the fused QKV weight/bias so each projection is a separate
    # VMEM-resident operand (no in-kernel weight column slicing).
    w_q, w_k, w_v = w_qkv[:, :C], w_qkv[:, C:2 * C], w_qkv[:, 2 * C:]
    b_q = b_qkv[:C].reshape(1, C)
    b_k = b_qkv[C:2 * C].reshape(1, C)
    b_v = b_qkv[2 * C:].reshape(1, C)
    b_p = b_proj.reshape(1, C)

    # Explicit VMEM budget: a config that fits v6e/v5e's 128 MiB must also be
    # sized for v7x's 64 MiB physical / 32 MiB default scoped limit and v5e's
    # 16 MiB default scoped limit.
    act_bytes = jnp.dtype(x.dtype).itemsize
    w_bytes = jnp.dtype(w_qkv.dtype).itemsize
    resident = (4 * C * C + 4 * C) * w_bytes                   # W_q/k/v/proj + biases
    streamed = 2 * (T * C + tq * C) * act_bytes                # double-buffered x / out
    scratch = (3 * T * C + tq * C) * act_bytes                 # q/k/v/y VMEM buffers
    temps = 3 * T * C * 4 + 2 * tq * C * 4 + 4 * tq * tk * 4   # f32 proj temps + scores
    vmem_limit = int(min(64 * 1024 * 1024,
                         max(24 * 1024 * 1024,
                             1.5 * (resident + streamed + scratch + temps))))

    # Advisory cost hint (causal attention does ~half the dense score FLOPs).
    flops = (2 * B * T * C * 3 * C                    # QKV projection
             + 2 * B * n_head * (T * T // 2) * hs * 2  # q@k^T + p@v (causal)
             + 2 * B * T * C * C)                      # output projection
    transcendentals = B * n_head * (T * T // 2)
    bytes_accessed = int(2 * x.nbytes + w_qkv.nbytes + b_qkv.nbytes
                         + w_proj.nbytes + b_proj.nbytes)

    kernel = functools.partial(_attn_kernel, n_head=n_head, tq=tq, tk=tk)

    return pl.pallas_call(
        kernel,
        out_shape=jax.ShapeDtypeStruct((B, T, C), x.dtype),
        grid_spec=pltpu.PrefetchScalarGridSpec(
            num_scalar_prefetch=0,
            grid=(B, n_q),                 # batch x query-tiles
            in_specs=[
                pl.BlockSpec((1, T, C), lambda b, q: (b, 0, 0)),  # x row (reused over q)
                pl.BlockSpec((C, C), lambda b, q: (0, 0)),        # W_q (resident)
                pl.BlockSpec((C, C), lambda b, q: (0, 0)),        # W_k
                pl.BlockSpec((C, C), lambda b, q: (0, 0)),        # W_v
                pl.BlockSpec((1, C), lambda b, q: (0, 0)),        # b_q
                pl.BlockSpec((1, C), lambda b, q: (0, 0)),        # b_k
                pl.BlockSpec((1, C), lambda b, q: (0, 0)),        # b_v
                pl.BlockSpec((C, C), lambda b, q: (0, 0)),        # W_proj
                pl.BlockSpec((1, C), lambda b, q: (0, 0)),        # b_proj
            ],
            out_specs=pl.BlockSpec((1, tq, C), lambda b, q: (b, q, 0)),
            scratch_shapes=[
                pltpu.VMEM((T, C), x.dtype),    # q_buf (pre-scaled Q for the row)
                pltpu.VMEM((T, C), x.dtype),    # k_buf
                pltpu.VMEM((T, C), x.dtype),    # v_buf
                pltpu.VMEM((tq, C), x.dtype),   # y_buf (per-head outs -> one proj)
            ],
        ),
        compiler_params=pltpu.CompilerParams(
            # Batch axis is independent -> megacore-shardable; q-tile axis is
            # "arbitrary" (q_tile==0 fills the K/V scratch the later tiles use).
            dimension_semantics=("parallel", "arbitrary"),
            vmem_limit_bytes=vmem_limit,
        ),
        cost_estimate=pl.CostEstimate(
            flops=flops,
            transcendentals=transcendentals,
            bytes_accessed=bytes_accessed,
        ),
    )(x, w_q, w_k, w_v, b_q, b_k, b_v, w_proj, b_p)


def causal_self_attention_reference(x, w_qkv, b_qkv, w_proj, b_proj, n_head):
    """Pure-JAX reference matching the PyTorch module's standard (flash) path."""
    B, T, C = x.shape
    hs = C // n_head
    xf = x.astype(jnp.float32)
    qkv = xf @ w_qkv.astype(jnp.float32) + b_qkv.astype(jnp.float32)
    q, k, v = jnp.split(qkv, 3, axis=-1)
    q = q.reshape(B, T, n_head, hs).transpose(0, 2, 1, 3)
    k = k.reshape(B, T, n_head, hs).transpose(0, 2, 1, 3)
    v = v.reshape(B, T, n_head, hs).transpose(0, 2, 1, 3)
    att = jnp.einsum('bhtd,bhsd->bhts', q, k) / math.sqrt(hs)
    mask = jnp.tril(jnp.ones((T, T), dtype=bool))
    att = jnp.where(mask[None, None], att, -jnp.inf)
    att = jax.nn.softmax(att, axis=-1)
    y = jnp.einsum('bhts,bhsd->bhtd', att, v)
    y = y.transpose(0, 2, 1, 3).reshape(B, T, C)
    out = y @ w_proj.astype(jnp.float32) + b_proj.astype(jnp.float32)
    return out.astype(x.dtype)


if __name__ == "__main__":
    # Config: n_embd=32, n_head=4 (head_size=8), block_size=16, bias=True,
    # dropout=0.0, use_dpp_attention=False (standard causal path).
    # tq=8 -> 2 query tiles, exercising the KV-scratch reuse and the dynamic
    # causal KV-block loop.
    B, T, C = 2, 16, 32
    n_head = 4

    key = jax.random.PRNGKey(0)
    kx, kw1, kb1, kw2, kb2 = jax.random.split(key, 5)

    x = jax.random.normal(kx, (B, T, C), dtype=jnp.float32)

    bound = 1.0 / math.sqrt(C)
    w_qkv = jax.random.uniform(kw1, (C, 3 * C), minval=-bound, maxval=bound,
                               dtype=jnp.float32)
    b_qkv = jax.random.uniform(kb1, (3 * C,), minval=-bound, maxval=bound,
                               dtype=jnp.float32)
    w_proj = jax.random.uniform(kw2, (C, C), minval=-bound, maxval=bound,
                                dtype=jnp.float32)
    b_proj = jax.random.uniform(kb2, (C,), minval=-bound, maxval=bound,
                                dtype=jnp.float32)

    y = causal_self_attention_pallas(x, w_qkv, b_qkv, w_proj, b_proj,
                                     n_head=n_head, tq=8)
    y = jax.block_until_ready(y)

    y_ref = causal_self_attention_reference(x, w_qkv, b_qkv, w_proj, b_proj,
                                            n_head)
    assert y.shape == (B, T, C)
    max_err = float(jnp.max(jnp.abs(y - y_ref)))
    # approx reciprocal (EUP vrcp) + online softmax accumulation order -> allow
    # a slightly looser tolerance than exact-f32.
    assert jnp.allclose(y, y_ref, atol=5e-3, rtol=5e-3), (
        f"mismatch vs reference (max abs err {max_err})")

    print("KERNEL_OK")
</pallas_src>

<mosaic_0001>
module attributes {stable_mosaic.version = 11 : i64} {
  func.func @_attn_kernel(%arg0: i32, %arg1: i32, %arg2: memref<1x16x32xf32, #tpu.memory_space<vmem>>, %arg3: memref<32x32xf32, #tpu.memory_space<vmem>>, %arg4: memref<32x32xf32, #tpu.memory_space<vmem>>, %arg5: memref<32x32xf32, #tpu.memory_space<vmem>>, %arg6: memref<1x32xf32, #tpu.memory_space<vmem>>, %arg7: memref<1x32xf32, #tpu.memory_space<vmem>>, %arg8: memref<1x32xf32, #tpu.memory_space<vmem>>, %arg9: memref<32x32xf32, #tpu.memory_space<vmem>>, %arg10: memref<1x32xf32, #tpu.memory_space<vmem>>, %arg11: memref<1x8x32xf32, #tpu.memory_space<vmem>>, %arg12: memref<16x32xf32, #tpu.memory_space<vmem>>, %arg13: memref<16x32xf32, #tpu.memory_space<vmem>>, %arg14: memref<16x32xf32, #tpu.memory_space<vmem>>, %arg15: memref<8x32xf32, #tpu.memory_space<vmem>>) attributes {dimension_semantics = [#tpu.dimension_semantics<parallel>, #tpu.dimension_semantics<arbitrary>], iteration_bounds = array<i64: 2, 2>, scalar_prefetch = 0 : i64, scratch_operands = 4 : i64, tpu.core_type = #tpu.core_type<tc>, window_params = [{transform_indices = @transform_0, window_bounds = array<i64: 1, 16, 32>}, {pipeline_mode = #tpu.pipeline_mode<synchronous>, transform_indices = @transform_1, window_bounds = array<i64: 32, 32>}, {pipeline_mode = #tpu.pipeline_mode<synchronous>, transform_indices = @transform_2, window_bounds = array<i64: 32, 32>}, {pipeline_mode = #tpu.pipeline_mode<synchronous>, transform_indices = @transform_3, window_bounds = array<i64: 32, 32>}, {pipeline_mode = #tpu.pipeline_mode<synchronous>, transform_indices = @transform_4, window_bounds = array<i64: 1, 32>}, {pipeline_mode = #tpu.pipeline_mode<synchronous>, transform_indices = @transform_5, window_bounds = array<i64: 1, 32>}, {pipeline_mode = #tpu.pipeline_mode<synchronous>, transform_indices = @transform_6, window_bounds = array<i64: 1, 32>}, {pipeline_mode = #tpu.pipeline_mode<synchronous>, transform_indices = @transform_7, window_bounds = array<i64: 32, 32>}, {pipeline_mode = #tpu.pipeline_mode<synchronous>, transform_indices = @transform_8, window_bounds = array<i64: 1, 32>}, {transform_indices = @transform_9, window_bounds = array<i64: 1, 8, 32>}]} {
    %c0_i32 = arith.constant 0 : i32
    %0 = arith.cmpi eq, %arg1, %c0_i32 : i32
    %1 = arith.extui %0 : i1 to i32
    %c0_i32_0 = arith.constant 0 : i32
    %2 = arith.cmpi ne, %1, %c0_i32_0 : i32
    scf.if %2 {
      %c0_40 = arith.constant 0 : index
      %c0_41 = arith.constant 0 : index
      %c0_42 = arith.constant 0 : index
      %65 = vector.load %arg2[%c0_40, %c0_41, %c0_42] : memref<1x16x32xf32, #tpu.memory_space<vmem>>, vector<1x16x32xf32>
      %66 = vector.shape_cast %65 : vector<1x16x32xf32> to vector<16x32xf32>
      %c0_43 = arith.constant 0 : index
      %c0_44 = arith.constant 0 : index
      %67 = vector.load %arg3[%c0_43, %c0_44] : memref<32x32xf32, #tpu.memory_space<vmem>>, vector<32x32xf32>
      %cst_45 = arith.constant dense<0.000000e+00> : vector<16x32xf32>
      %68 = tpu.matmul %66, %67, %cst_45 {dimension_numbers = #tpu.dot_dimension_numbers<[1], [0], [0], [1], [0, 0, 1, 1], [], []>} : vector<16x32xf32>, vector<32x32xf32>, vector<16x32xf32> -> vector<16x32xf32>
      %c0_46 = arith.constant 0 : index
      %c0_47 = arith.constant 0 : index
      %69 = vector.load %arg6[%c0_46, %c0_47] : memref<1x32xf32, #tpu.memory_space<vmem>>, vector<1x32xf32>
      %70 = vector.broadcast %69 : vector<1x32xf32> to vector<16x32xf32>
      %71 = arith.addf %68, %70 : vector<16x32xf32>
      %cst_48 = arith.constant 0.353553385 : f32
      %72 = vector.broadcast %cst_48 : f32 to vector<16x32xf32>
      %73 = arith.mulf %71, %72 : vector<16x32xf32>
      %c0_49 = arith.constant 0 : index
      %c0_50 = arith.constant 0 : index
      %74 = vector.load %arg12[%c0_49, %c0_50] : memref<16x32xf32, #tpu.memory_space<vmem>>, vector<16x32xf32>
      tpu.vector_store %arg12[%c0_49, %c0_50], %73 {strides = array<i32>} : memref<16x32xf32, #tpu.memory_space<vmem>>, vector<16x32xf32>,
      %c0_51 = arith.constant 0 : index
      %c0_52 = arith.constant 0 : index
      %75 = vector.load %arg4[%c0_51, %c0_52] : memref<32x32xf32, #tpu.memory_space<vmem>>, vector<32x32xf32>
      %cst_53 = arith.constant dense<0.000000e+00> : vector<16x32xf32>
      %76 = tpu.matmul %66, %75, %cst_53 {dimension_numbers = #tpu.dot_dimension_numbers<[1], [0], [0], [1], [0, 0, 1, 1], [], []>} : vector<16x32xf32>, vector<32x32xf32>, vector<16x32xf32> -> vector<16x32xf32>
      %c0_54 = arith.constant 0 : index
      %c0_55 = arith.constant 0 : index
      %77 = vector.load %arg7[%c0_54, %c0_55] : memref<1x32xf32, #tpu.memory_space<vmem>>, vector<1x32xf32>
      %78 = vector.broadcast %77 : vector<1x32xf32> to vector<16x32xf32>
      %79 = arith.addf %76, %78 : vector<16x32xf32>
      %c0_56 = arith.constant 0 : index
      %c0_57 = arith.constant 0 : index
      %80 = vector.load %arg13[%c0_56, %c0_57] : memref<16x32xf32, #tpu.memory_space<vmem>>, vector<16x32xf32>
      tpu.vector_store %arg13[%c0_56, %c0_57], %79 {strides = array<i32>} : memref<16x32xf32, #tpu.memory_space<vmem>>, vector<16x32xf32>,
      %c0_58 = arith.constant 0 : index
      %c0_59 = arith.constant 0 : index
      %81 = vector.load %arg5[%c0_58, %c0_59] : memref<32x32xf32, #tpu.memory_space<vmem>>, vector<32x32xf32>
      %cst_60 = arith.constant dense<0.000000e+00> : vector<16x32xf32>
      %82 = tpu.matmul %66, %81, %cst_60 {dimension_numbers = #tpu.dot_dimension_numbers<[1], [0], [0], [1], [0, 0, 1, 1], [], []>} : vector<16x32xf32>, vector<32x32xf32>, vector<16x32xf32> -> vector<16x32xf32>
      %c0_61 = arith.constant 0 : index
      %c0_62 = arith.constant 0 : index
      %83 = vector.load %arg8[%c0_61, %c0_62] : memref<1x32xf32, #tpu.memory_space<vmem>>, vector<1x32xf32>
      %84 = vector.broadcast %83 : vector<1x32xf32> to vector<16x32xf32>
      %85 = arith.addf %82, %84 : vector<16x32xf32>
      %c0_63 = arith.constant 0 : index
      %c0_64 = arith.constant 0 : index
      %86 = vector.load %arg14[%c0_63, %c0_64] : memref<16x32xf32, #tpu.memory_space<vmem>>, vector<16x32xf32>
      tpu.vector_store %arg14[%c0_63, %c0_64], %85 {strides = array<i32>} : memref<16x32xf32, #tpu.memory_space<vmem>>, vector<16x32xf32>,
    } else {
    }
    %c8_i32 = arith.constant 8 : i32
    %3 = arith.muli %arg1, %c8_i32 : i32
    %4 = tpu.assume_multiple %3, 8 : i32
    %5 = arith.index_cast %4 : i32 to index
    %c0 = arith.constant 0 : index
    %6 = vector.load %arg12[%5, %c0] : memref<16x32xf32, #tpu.memory_space<vmem>>, vector<8x32xf32>
    %c8_i32_1 = arith.constant 8 : i32
    %7 = arith.muli %arg1, %c8_i32_1 : i32
    %8 = tpu.iota {dimensions = array<i32: 0>} : vector<8x8xi32>
    %9 = vector.broadcast %7 : i32 to vector<8x8xi32>
    %10 = arith.addi %9, %8 : vector<8x8xi32>
    %c1_i32 = arith.constant 1 : i32
    %11 = arith.addi %arg1, %c1_i32 : i32
    %12 = vector.extract_strided_slice %6 {offsets = [0, 0], sizes = [8, 8], strides = [1, 1]} : vector<8x32xf32> to vector<8x8xf32>
    %cst = arith.constant -1.000000e+30 : f32
    %13 = vector.broadcast %cst : f32 to vector<8x1xf32>
    %cst_2 = arith.constant 0.000000e+00 : f32
    %14 = vector.broadcast %cst_2 : f32 to vector<8x1xf32>
    %cst_3 = arith.constant 0.000000e+00 : f32
    %15 = vector.broadcast %cst_3 : f32 to vector<8x8xf32>
    %cst_4 = arith.constant -1.000000e+30 : f32
    %c0_i32_5 = arith.constant 0 : i32
    %16 = arith.subi %11, %c0_i32_5 : i32
    %17 = arith.addi %c0_i32_5, %16 : i32
    %c1_i32_6 = arith.constant 1 : i32
    %18:3 = scf.for %arg16 = %c0_i32_5 to %17 step %c1_i32_6 iter_args(%arg17 = %13, %arg18 = %14, %arg19 = %15) -> (vector<8x1xf32>, vector<8x1xf32>, vector<8x8xf32>)  : i32 {
      %c8_i32_40 = arith.constant 8 : i32
      %65 = arith.muli %arg16, %c8_i32_40 : i32
      %66 = tpu.assume_multiple %65, 8 : i32
      %67 = arith.index_cast %66 : i32 to index
      %c0_41 = arith.constant 0 : index
      %68 = vector.load %arg13[%67, %c0_41] : memref<16x32xf32, #tpu.memory_space<vmem>>, vector<8x8xf32>
      %69 = arith.index_cast %66 : i32 to index
      %c0_42 = arith.constant 0 : index
      %70 = vector.load %arg14[%69, %c0_42] : memref<16x32xf32, #tpu.memory_space<vmem>>, vector<8x8xf32>
      %cst_43 = arith.constant dense<0.000000e+00> : vector<8x8xf32>
      %71 = tpu.matmul %12, %68, %cst_43 {dimension_numbers = #tpu.dot_dimension_numbers<[1], [1], [0], [0], [0, 0, 1, 0], [], []>} : vector<8x8xf32>, vector<8x8xf32>, vector<8x8xf32> -> vector<8x8xf32>
      %c8_i32_44 = arith.constant 8 : i32
      %72 = arith.muli %arg16, %c8_i32_44 : i32
      %73 = tpu.iota {dimensions = array<i32: 1>} : vector<8x8xi32>
      %74 = vector.broadcast %72 : i32 to vector<8x8xi32>
      %75 = arith.addi %74, %73 : vector<8x8xi32>
      %76 = arith.cmpi sge, %10, %75 : vector<8x8xi32>
      %77 = vector.broadcast %cst_4 : f32 to vector<8x8xf32>
      %78 = arith.select %76, %71, %77 : vector<8x8xi1>, vector<8x8xf32>
      %cst_45 = arith.constant dense<0xFF800000> : vector<8xf32>
      %79 = vector.multi_reduction <maximumf>, %78, %cst_45 [1] : vector<8x8xf32> to vector<8xf32>
      %80 = vector.shape_cast %79 : vector<8xf32> to vector<8x1xf32>
      %81 = arith.maximumf %arg17, %80 : vector<8x1xf32>
      %82 = arith.subf %arg17, %81 : vector<8x1xf32>
      %83 = math.exp %82 : vector<8x1xf32>
      %84 = vector.broadcast %81 : vector<8x1xf32> to vector<8x8xf32>
      %85 = arith.subf %78, %84 : vector<8x8xf32>
      %86 = math.exp %85 : vector<8x8xf32>
      %87 = arith.mulf %83, %arg18 : vector<8x1xf32>
      %cst_46 = arith.constant dense<0.000000e+00> : vector<8xf32>
      %88 = vector.multi_reduction <add>, %86, %cst_46 [1] : vector<8x8xf32> to vector<8xf32>
      %89 = vector.shape_cast %88 : vector<8xf32> to vector<8x1xf32>
      %90 = arith.addf %87, %89 : vector<8x1xf32>
      %91 = vector.broadcast %83 : vector<8x1xf32> to vector<8x8xf32>
      %92 = arith.mulf %91, %arg19 : vector<8x8xf32>
      %cst_47 = arith.constant dense<0.000000e+00> : vector<8x8xf32>
      %93 = tpu.matmul %86, %70, %cst_47 {dimension_numbers = #tpu.dot_dimension_numbers<[1], [0], [0], [1], [0, 0, 1, 1], [], []>} : vector<8x8xf32>, vector<8x8xf32>, vector<8x8xf32> -> vector<8x8xf32>
      %94 = arith.addf %92, %93 : vector<8x8xf32>
      scf.yield %81, %90, %94 : vector<8x1xf32>, vector<8x1xf32>, vector<8x8xf32>
    }
    %19 = tpu.reciprocal %18#1 {approx = true} : vector<8x1xf32> -> vector<8x1xf32>
    %20 = vector.broadcast %19 : vector<8x1xf32> to vector<8x8xf32>
    %21 = arith.mulf %18#2, %20 : vector<8x8xf32>
    %c0_7 = arith.constant 0 : index
    %c0_8 = arith.constant 0 : index
    %22 = vector.load %arg15[%c0_7, %c0_8] : memref<8x32xf32, #tpu.memory_space<vmem>>, vector<8x8xf32>
    tpu.vector_store %arg15[%c0_7, %c0_8], %21 {strides = array<i32>} : memref<8x32xf32, #tpu.memory_space<vmem>>, vector<8x8xf32>,
    %23 = vector.extract_strided_slice %6 {offsets = [0, 8], sizes = [8, 8], strides = [1, 1]} : vector<8x32xf32> to vector<8x8xf32>
    %cst_9 = arith.constant -1.000000e+30 : f32
    %24 = vector.broadcast %cst_9 : f32 to vector<8x1xf32>
    %cst_10 = arith.constant 0.000000e+00 : f32
    %25 = vector.broadcast %cst_10 : f32 to vector<8x1xf32>
    %cst_11 = arith.constant 0.000000e+00 : f32
    %26 = vector.broadcast %cst_11 : f32 to vector<8x8xf32>
    %cst_12 = arith.constant -1.000000e+30 : f32
    %c0_i32_13 = arith.constant 0 : i32
    %27 = arith.subi %11, %c0_i32_13 : i32
    %28 = arith.addi %c0_i32_13, %27 : i32
    %c1_i32_14 = arith.constant 1 : i32
    %29:3 = scf.for %arg16 = %c0_i32_13 to %28 step %c1_i32_14 iter_args(%arg17 = %24, %arg18 = %25, %arg19 = %26) -> (vector<8x1xf32>, vector<8x1xf32>, vector<8x8xf32>)  : i32 {
      %c8_i32_40 = arith.constant 8 : i32
      %65 = arith.muli %arg16, %c8_i32_40 : i32
      %66 = tpu.assume_multiple %65, 8 : i32
      %67 = arith.index_cast %66 : i32 to index
      %c8_41 = arith.constant 8 : index
      %68 = vector.load %arg13[%67, %c8_41] : memref<16x32xf32, #tpu.memory_space<vmem>>, vector<8x8xf32>
      %69 = arith.index_cast %66 : i32 to index
      %c8_42 = arith.constant 8 : index
      %70 = vector.load %arg14[%69, %c8_42] : memref<16x32xf32, #tpu.memory_space<vmem>>, vector<8x8xf32>
      %cst_43 = arith.constant dense<0.000000e+00> : vector<8x8xf32>
      %71 = tpu.matmul %23, %68, %cst_43 {dimension_numbers = #tpu.dot_dimension_numbers<[1], [1], [0], [0], [0, 0, 1, 0], [], []>} : vector<8x8xf32>, vector<8x8xf32>, vector<8x8xf32> -> vector<8x8xf32>
      %c8_i32_44 = arith.constant 8 : i32
      %72 = arith.muli %arg16, %c8_i32_44 : i32
      %73 = tpu.iota {dimensions = array<i32: 1>} : vector<8x8xi32>
      %74 = vector.broadcast %72 : i32 to vector<8x8xi32>
      %75 = arith.addi %74, %73 : vector<8x8xi32>
      %76 = arith.cmpi sge, %10, %75 : vector<8x8xi32>
      %77 = vector.broadcast %cst_12 : f32 to vector<8x8xf32>
      %78 = arith.select %76, %71, %77 : vector<8x8xi1>, vector<8x8xf32>
      %cst_45 = arith.constant dense<0xFF800000> : vector<8xf32>
      %79 = vector.multi_reduction <maximumf>, %78, %cst_45 [1] : vector<8x8xf32> to vector<8xf32>
      %80 = vector.shape_cast %79 : vector<8xf32> to vector<8x1xf32>
      %81 = arith.maximumf %arg17, %80 : vector<8x1xf32>
      %82 = arith.subf %arg17, %81 : vector<8x1xf32>
      %83 = math.exp %82 : vector<8x1xf32>
      %84 = vector.broadcast %81 : vector<8x1xf32> to vector<8x8xf32>
      %85 = arith.subf %78, %84 : vector<8x8xf32>
      %86 = math.exp %85 : vector<8x8xf32>
      %87 = arith.mulf %83, %arg18 : vector<8x1xf32>
      %cst_46 = arith.constant dense<0.000000e+00> : vector<8xf32>
      %88 = vector.multi_reduction <add>, %86, %cst_46 [1] : vector<8x8xf32> to vector<8xf32>
      %89 = vector.shape_cast %88 : vector<8xf32> to vector<8x1xf32>
      %90 = arith.addf %87, %89 : vector<8x1xf32>
      %91 = vector.broadcast %83 : vector<8x1xf32> to vector<8x8xf32>
      %92 = arith.mulf %91, %arg19 : vector<8x8xf32>
      %cst_47 = arith.constant dense<0.000000e+00> : vector<8x8xf32>
      %93 = tpu.matmul %86, %70, %cst_47 {dimension_numbers = #tpu.dot_dimension_numbers<[1], [0], [0], [1], [0, 0, 1, 1], [], []>} : vector<8x8xf32>, vector<8x8xf32>, vector<8x8xf32> -> vector<8x8xf32>
      %94 = arith.addf %92, %93 : vector<8x8xf32>
      scf.yield %81, %90, %94 : vector<8x1xf32>, vector<8x1xf32>, vector<8x8xf32>
    }
    %30 = tpu.reciprocal %29#1 {approx = true} : vector<8x1xf32> -> vector<8x1xf32>
    %31 = vector.broadcast %30 : vector<8x1xf32> to vector<8x8xf32>
    %32 = arith.mulf %29#2, %31 : vector<8x8xf32>
    %c0_15 = arith.constant 0 : index
    %c8 = arith.constant 8 : index
    %33 = vector.load %arg15[%c0_15, %c8] : memref<8x32xf32, #tpu.memory_space<vmem>>, vector<8x8xf32>
    tpu.vector_store %arg15[%c0_15, %c8], %32 {strides = array<i32>} : memref<8x32xf32, #tpu.memory_space<vmem>>, vector<8x8xf32>,
    %34 = vector.extract_strided_slice %6 {offsets = [0, 16], sizes = [8, 8], strides = [1, 1]} : vector<8x32xf32> to vector<8x8xf32>
    %cst_16 = arith.constant -1.000000e+30 : f32
    %35 = vector.broadcast %cst_16 : f32 to vector<8x1xf32>
    %cst_17 = arith.constant 0.000000e+00 : f32
    %36 = vector.broadcast %cst_17 : f32 to vector<8x1xf32>
    %cst_18 = arith.constant 0.000000e+00 : f32
    %37 = vector.broadcast %cst_18 : f32 to vector<8x8xf32>
    %cst_19 = arith.constant -1.000000e+30 : f32
    %c0_i32_20 = arith.constant 0 : i32
    %38 = arith.subi %11, %c0_i32_20 : i32
    %39 = arith.addi %c0_i32_20, %38 : i32
    %c1_i32_21 = arith.constant 1 : i32
    %40:3 = scf.for %arg16 = %c0_i32_20 to %39 step %c1_i32_21 iter_args(%arg17 = %35, %arg18 = %36, %arg19 = %37) -> (vector<8x1xf32>, vector<8x1xf32>, vector<8x8xf32>)  : i32 {
      %c8_i32_40 = arith.constant 8 : i32
      %65 = arith.muli %arg16, %c8_i32_40 : i32
      %66 = tpu.assume_multiple %65, 8 : i32
      %67 = arith.index_cast %66 : i32 to index
      %c16_41 = arith.constant 16 : index
      %68 = vector.load %arg13[%67, %c16_41] : memref<16x32xf32, #tpu.memory_space<vmem>>, vector<8x8xf32>
      %69 = arith.index_cast %66 : i32 to index
      %c16_42 = arith.constant 16 : index
      %70 = vector.load %arg14[%69, %c16_42] : memref<16x32xf32, #tpu.memory_space<vmem>>, vector<8x8xf32>
      %cst_43 = arith.constant dense<0.000000e+00> : vector<8x8xf32>
      %71 = tpu.matmul %34, %68, %cst_43 {dimension_numbers = #tpu.dot_dimension_numbers<[1], [1], [0], [0], [0, 0, 1, 0], [], []>} : vector<8x8xf32>, vector<8x8xf32>, vector<8x8xf32> -> vector<8x8xf32>
      %c8_i32_44 = arith.constant 8 : i32
      %72 = arith.muli %arg16, %c8_i32_44 : i32
      %73 = tpu.iota {dimensions = array<i32: 1>} : vector<8x8xi32>
      %74 = vector.broadcast %72 : i32 to vector<8x8xi32>
      %75 = arith.addi %74, %73 : vector<8x8xi32>
      %76 = arith.cmpi sge, %10, %75 : vector<8x8xi32>
      %77 = vector.broadcast %cst_19 : f32 to vector<8x8xf32>
      %78 = arith.select %76, %71, %77 : vector<8x8xi1>, vector<8x8xf32>
      %cst_45 = arith.constant dense<0xFF800000> : vector<8xf32>
      %79 = vector.multi_reduction <maximumf>, %78, %cst_45 [1] : vector<8x8xf32> to vector<8xf32>
      %80 = vector.shape_cast %79 : vector<8xf32> to vector<8x1xf32>
      %81 = arith.maximumf %arg17, %80 : vector<8x1xf32>
      %82 = arith.subf %arg17, %81 : vector<8x1xf32>
      %83 = math.exp %82 : vector<8x1xf32>
      %84 = vector.broadcast %81 : vector<8x1xf32> to vector<8x8xf32>
      %85 = arith.subf %78, %84 : vector<8x8xf32>
      %86 = math.exp %85 : vector<8x8xf32>
      %87 = arith.mulf %83, %arg18 : vector<8x1xf32>
      %cst_46 = arith.constant dense<0.000000e+00> : vector<8xf32>
      %88 = vector.multi_reduction <add>, %86, %cst_46 [1] : vector<8x8xf32> to vector<8xf32>
      %89 = vector.shape_cast %88 : vector<8xf32> to vector<8x1xf32>
      %90 = arith.addf %87, %89 : vector<8x1xf32>
      %91 = vector.broadcast %83 : vector<8x1xf32> to vector<8x8xf32>
      %92 = arith.mulf %91, %arg19 : vector<8x8xf32>
      %cst_47 = arith.constant dense<0.000000e+00> : vector<8x8xf32>
      %93 = tpu.matmul %86, %70, %cst_47 {dimension_numbers = #tpu.dot_dimension_numbers<[1], [0], [0], [1], [0, 0, 1, 1], [], []>} : vector<8x8xf32>, vector<8x8xf32>, vector<8x8xf32> -> vector<8x8xf32>
      %94 = arith.addf %92, %93 : vector<8x8xf32>
      scf.yield %81, %90, %94 : vector<8x1xf32>, vector<8x1xf32>, vector<8x8xf32>
    }
    %41 = tpu.reciprocal %40#1 {approx = true} : vector<8x1xf32> -> vector<8x1xf32>
    %42 = vector.broadcast %41 : vector<8x1xf32> to vector<8x8xf32>
    %43 = arith.mulf %40#2, %42 : vector<8x8xf32>
    %c0_22 = arith.constant 0 : index
    %c16 = arith.constant 16 : index
    %44 = vector.load %arg15[%c0_22, %c16] : memref<8x32xf32, #tpu.memory_space<vmem>>, vector<8x8xf32>
    tpu.vector_store %arg15[%c0_22, %c16], %43 {strides = array<i32>} : memref<8x32xf32, #tpu.memory_space<vmem>>, vector<8x8xf32>,
    %45 = vector.extract_strided_slice %6 {offsets = [0, 24], sizes = [8, 8], strides = [1, 1]} : vector<8x32xf32> to vector<8x8xf32>
    %cst_23 = arith.constant -1.000000e+30 : f32
    %46 = vector.broadcast %cst_23 : f32 to vector<8x1xf32>
    %cst_24 = arith.constant 0.000000e+00 : f32
    %47 = vector.broadcast %cst_24 : f32 to vector<8x1xf32>
    %cst_25 = arith.constant 0.000000e+00 : f32
    %48 = vector.broadcast %cst_25 : f32 to vector<8x8xf32>
    %cst_26 = arith.constant -1.000000e+30 : f32
    %c0_i32_27 = arith.constant 0 : i32
    %49 = arith.subi %11, %c0_i32_27 : i32
    %50 = arith.addi %c0_i32_27, %49 : i32
    %c1_i32_28 = arith.constant 1 : i32
    %51:3 = scf.for %arg16 = %c0_i32_27 to %50 step %c1_i32_28 iter_args(%arg17 = %46, %arg18 = %47, %arg19 = %48) -> (vector<8x1xf32>, vector<8x1xf32>, vector<8x8xf32>)  : i32 {
      %c8_i32_40 = arith.constant 8 : i32
      %65 = arith.muli %arg16, %c8_i32_40 : i32
      %66 = tpu.assume_multiple %65, 8 : i32
      %67 = arith.index_cast %66 : i32 to index
      %c24_41 = arith.constant 24 : index
      %68 = vector.load %arg13[%67, %c24_41] : memref<16x32xf32, #tpu.memory_space<vmem>>, vector<8x8xf32>
      %69 = arith.index_cast %66 : i32 to index
      %c24_42 = arith.constant 24 : index
      %70 = vector.load %arg14[%69, %c24_42] : memref<16x32xf32, #tpu.memory_space<vmem>>, vector<8x8xf32>
      %cst_43 = arith.constant dense<0.000000e+00> : vector<8x8xf32>
      %71 = tpu.matmul %45, %68, %cst_43 {dimension_numbers = #tpu.dot_dimension_numbers<[1], [1], [0], [0], [0, 0, 1, 0], [], []>} : vector<8x8xf32>, vector<8x8xf32>, vector<8x8xf32> -> vector<8x8xf32>
      %c8_i32_44 = arith.constant 8 : i32
      %72 = arith.muli %arg16, %c8_i32_44 : i32
      %73 = tpu.iota {dimensions = array<i32: 1>} : vector<8x8xi32>
      %74 = vector.broadcast %72 : i32 to vector<8x8xi32>
      %75 = arith.addi %74, %73 : vector<8x8xi32>
      %76 = arith.cmpi sge, %10, %75 : vector<8x8xi32>
      %77 = vector.broadcast %cst_26 : f32 to vector<8x8xf32>
      %78 = arith.select %76, %71, %77 : vector<8x8xi1>, vector<8x8xf32>
      %cst_45 = arith.constant dense<0xFF800000> : vector<8xf32>
      %79 = vector.multi_reduction <maximumf>, %78, %cst_45 [1] : vector<8x8xf32> to vector<8xf32>
      %80 = vector.shape_cast %79 : vector<8xf32> to vector<8x1xf32>
      %81 = arith.maximumf %arg17, %80 : vector<8x1xf32>
      %82 = arith.subf %arg17, %81 : vector<8x1xf32>
      %83 = math.exp %82 : vector<8x1xf32>
      %84 = vector.broadcast %81 : vector<8x1xf32> to vector<8x8xf32>
      %85 = arith.subf %78, %84 : vector<8x8xf32>
      %86 = math.exp %85 : vector<8x8xf32>
      %87 = arith.mulf %83, %arg18 : vector<8x1xf32>
      %cst_46 = arith.constant dense<0.000000e+00> : vector<8xf32>
      %88 = vector.multi_reduction <add>, %86, %cst_46 [1] : vector<8x8xf32> to vector<8xf32>
      %89 = vector.shape_cast %88 : vector<8xf32> to vector<8x1xf32>
      %90 = arith.addf %87, %89 : vector<8x1xf32>
      %91 = vector.broadcast %83 : vector<8x1xf32> to vector<8x8xf32>
      %92 = arith.mulf %91, %arg19 : vector<8x8xf32>
      %cst_47 = arith.constant dense<0.000000e+00> : vector<8x8xf32>
      %93 = tpu.matmul %86, %70, %cst_47 {dimension_numbers = #tpu.dot_dimension_numbers<[1], [0], [0], [1], [0, 0, 1, 1], [], []>} : vector<8x8xf32>, vector<8x8xf32>, vector<8x8xf32> -> vector<8x8xf32>
      %94 = arith.addf %92, %93 : vector<8x8xf32>
      scf.yield %81, %90, %94 : vector<8x1xf32>, vector<8x1xf32>, vector<8x8xf32>
    }
    %52 = tpu.reciprocal %51#1 {approx = true} : vector<8x1xf32> -> vector<8x1xf32>
    %53 = vector.broadcast %52 : vector<8x1xf32> to vector<8x8xf32>
    %54 = arith.mulf %51#2, %53 : vector<8x8xf32>
    %c0_29 = arith.constant 0 : index
    %c24 = arith.constant 24 : index
    %55 = vector.load %arg15[%c0_29, %c24] : memref<8x32xf32, #tpu.memory_space<vmem>>, vector<8x8xf32>
    tpu.vector_store %arg15[%c0_29, %c24], %54 {strides = array<i32>} : memref<8x32xf32, #tpu.memory_space<vmem>>, vector<8x8xf32>,
    %c0_30 = arith.constant 0 : index
    %c0_31 = arith.constant 0 : index
    %56 = vector.load %arg15[%c0_30, %c0_31] : memref<8x32xf32, #tpu.memory_space<vmem>>, vector<8x32xf32>
    %c0_32 = arith.constant 0 : index
    %c0_33 = arith.constant 0 : index
    %57 = vector.load %arg9[%c0_32, %c0_33] : memref<32x32xf32, #tpu.memory_space<vmem>>, vector<32x32xf32>
    %cst_34 = arith.constant dense<0.000000e+00> : vector<8x32xf32>
    %58 = tpu.matmul %56, %57, %cst_34 {dimension_numbers = #tpu.dot_dimension_numbers<[1], [0], [0], [1], [0, 0, 1, 1], [], []>} : vector<8x32xf32>, vector<32x32xf32>, vector<8x32xf32> -> vector<8x32xf32>
    %c0_35 = arith.constant 0 : index
    %c0_36 = arith.constant 0 : index
    %59 = vector.load %arg10[%c0_35, %c0_36] : memref<1x32xf32, #tpu.memory_space<vmem>>, vector<1x32xf32>
    %60 = vector.broadcast %59 : vector<1x32xf32> to vector<8x32xf32>
    %61 = arith.addf %58, %60 : vector<8x32xf32>
    %c0_37 = arith.constant 0 : index
    %c0_38 = arith.constant 0 : index
    %c0_39 = arith.constant 0 : index
    %62 = vector.load %arg11[%c0_37, %c0_38, %c0_39] : memref<1x8x32xf32, #tpu.memory_space<vmem>>, vector<1x8x32xf32>
    %63 = vector.shape_cast %62 : vector<1x8x32xf32> to vector<8x32xf32>
    %64 = vector.shape_cast %61 : vector<8x32xf32> to vector<1x8x32xf32>
    tpu.vector_store %arg11[%c0_37, %c0_38, %c0_39], %64 {strides = array<i32>} : memref<1x8x32xf32, #tpu.memory_space<vmem>>, vector<1x8x32xf32>,
    return
  }
  func.func @transform_0(%arg0: i32, %arg1: i32) -> (i32, i32, i32) {
    %c0_i32 = arith.constant 0 : i32
    %c0_i32_0 = arith.constant 0 : i32
    %c0_i32_1 = arith.constant 0 : i32
    return %arg0, %c0_i32, %c0_i32_0 : i32, i32, i32
  }
  func.func @transform_1(%arg0: i32, %arg1: i32) -> (i32, i32) {
    %c0_i32 = arith.constant 0 : i32
    %c0_i32_0 = arith.constant 0 : i32
    %c0_i32_1 = arith.constant 0 : i32
    return %c0_i32, %c0_i32_0 : i32, i32
  }
  func.func @transform_2(%arg0: i32, %arg1: i32) -> (i32, i32) {
    %c0_i32 = arith.constant 0 : i32
    %c0_i32_0 = arith.constant 0 : i32
    %c0_i32_1 = arith.constant 0 : i32
    return %c0_i32, %c0_i32_0 : i32, i32
  }
  func.func @transform_3(%arg0: i32, %arg1: i32) -> (i32, i32) {
    %c0_i32 = arith.constant 0 : i32
    %c0_i32_0 = arith.constant 0 : i32
    %c0_i32_1 = arith.constant 0 : i32
    return %c0_i32, %c0_i32_0 : i32, i32
  }
  func.func @transform_4(%arg0: i32, %arg1: i32) -> (i32, i32) {
    %c0_i32 = arith.constant 0 : i32
    %c0_i32_0 = arith.constant 0 : i32
    %c0_i32_1 = arith.constant 0 : i32
    return %c0_i32, %c0_i32_0 : i32, i32
  }
  func.func @transform_5(%arg0: i32, %arg1: i32) -> (i32, i32) {
    %c0_i32 = arith.constant 0 : i32
    %c0_i32_0 = arith.constant 0 : i32
    %c0_i32_1 = arith.constant 0 : i32
    return %c0_i32, %c0_i32_0 : i32, i32
  }
  func.func @transform_6(%arg0: i32, %arg1: i32) -> (i32, i32) {
    %c0_i32 = arith.constant 0 : i32
    %c0_i32_0 = arith.constant 0 : i32
    %c0_i32_1 = arith.constant 0 : i32
    return %c0_i32, %c0_i32_0 : i32, i32
  }
  func.func @transform_7(%arg0: i32, %arg1: i32) -> (i32, i32) {
    %c0_i32 = arith.constant 0 : i32
    %c0_i32_0 = arith.constant 0 : i32
    %c0_i32_1 = arith.constant 0 : i32
    return %c0_i32, %c0_i32_0 : i32, i32
  }
  func.func @transform_8(%arg0: i32, %arg1: i32) -> (i32, i32) {
    %c0_i32 = arith.constant 0 : i32
    %c0_i32_0 = arith.constant 0 : i32
    %c0_i32_1 = arith.constant 0 : i32
    return %c0_i32, %c0_i32_0 : i32, i32
  }
  func.func @transform_9(%arg0: i32, %arg1: i32) -> (i32, i32, i32) {
    %c0_i32 = arith.constant 0 : i32
    %c0_i32_0 = arith.constant 0 : i32
    return %arg0, %arg1, %c0_i32 : i32, i32, i32
  }
}

</mosaic_0001>

<bundles_post_ra>
// kernel: tpu_custom_call.1
= control target key start
LH: loop header
LB: loop body
LE: loop exit
PB: predicated region body
PF: predicated region fallthrough
CT: control target
= control target key end

     0   :  { %s3500_s0 = inlined_call_operand.hbm [shape: f32[2,16,32], index: 0, kind: input, shape index: {}]   ;;  %s3501_s1 = inlined_call_operand.hbm [shape: f32[32,32], index: 1, kind: input, shape index: {}]   ;;  %s3502_s2 = inlined_call_operand.hbm [shape: f32[32,32], index: 2, kind: input, shape index: {}]   ;;  %s3503_s3 = inlined_call_operand.hbm [shape: f32[32,32], index: 3, kind: input, shape index: {}]   ;;  %s3504_s4 = inlined_call_operand.vmem [shape: f32[1,32], index: 4, kind: input, shape index: {}]   ;;  %s3505_s5 = inlined_call_operand.vmem [shape: f32[1,32], index: 5, kind: input, shape index: {}]   ;;  %s3506_s6 = inlined_call_operand.vmem [shape: f32[1,32], index: 6, kind: input, shape index: {}]   ;;  %s3507_s7 = inlined_call_operand.hbm [shape: f32[32,32], index: 7, kind: input, shape index: {}]   ;;  %s3508_s8 = inlined_call_operand.vmem [shape: f32[1,32], index: 8, kind: input, shape index: {}]   ;;  %s3509_s9 = inlined_call_operand.hbm [shape: f32[2,16,32], index: 9, kind: output, shape index: {}]  }
   0x1   :  { %3523 = sst [smem:[#allocation25_spill]] %s3501_s1 }
   0x2   :  { %3524 = sst [smem:[#allocation26_spill]] %s3502_s2 }
   0x3   :  { %3525 = sst [smem:[#allocation27_spill]] %s3504_s4 }
   0x4   :  { %3526 = sst [smem:[#allocation28_spill]] %s3505_s5 }
   0x5   :  { %3527 = sst [smem:[#allocation29_spill]] %s3506_s6 }
   0x6   :  { %3528 = sst [smem:[#allocation30_spill]] %s3508_s8 }
   0x7   :  { %3529 = sst [smem:[#allocation31_spill]] %s3509_s9 }
   0x8   :  { %14 = vsyncpa [#allocation7], 0 }
   0x9   :  { %16 = vsyncpa [#allocation7 + $0x1], 0 }
   0xa   :  { %17 = vsyncpa [#allocation10], 0 }
   0xb   :  { %18 = vsyncpa [#allocation13], 0 }
   0xc   :  { %19 = vsyncpa [#allocation8], 0 }
   0xd   :  { %21 = vsyncpa [#allocation8 + $0x1], 0  ;;  %s2934_s30 = smov 0   ;;  %s2936_s10 = smov 0  }
   0xe   :  { %s2938_s11 = smov 0   ;;  %s2940_s12 = smov 0  }
   0xf   :  { %s2942_s13 = smov 0   ;;  %s2944_s14 = smov 0  }
  0x10   :  { %s2946_s15 = smov 0   ;;  %s2948_s16 = smov 0  }
  0x11   :  { %s2950_s17 = smov 0   ;;  %s2952_s18 = smov 0  }
  0x12   :  { %s2954_s19 = smov 0  }
  0x13 LB: > { %3530 = sst [smem:[#allocation20_spill]] %s2721_s30  ;;  %s1805_s20 = sadd.s32 4294967295, %s2761_s19   ;;  %s2761_s19 = sphi %s2954_s19, %s27_s19   ;;  %s2757_s18 = sphi %s2952_s18, %s3591_s18   ;;  %s2753_s17 = sphi %s2950_s17, %s3590_s17   ;;  %s2749_s16 = sphi %s2948_s16, %s3589_s16   ;;  %s2745_s15 = sphi %s2946_s15, %s3588_s15   ;;  %s2741_s14 = sphi %s2944_s14, %s3587_s14   ;;  %s2737_s13 = sphi %s2942_s13, %s3586_s13   ;;  %s2733_s12 = sphi %s2940_s12, %s3585_s12   ;;  %s2729_s11 = sphi %s2938_s11, %s3584_s11   ;;  %s2725_s10 = sphi %s2936_s10, %s3583_s10   ;;  %s2721_s30 = sphi %s2934_s30, %s3582_s30  }
  0x14   : > { %3531 = sst [smem:[#allocation21_spill]] %s2745_s15  ;;  %s1806_s21 = sadd.s32 4294967294, %s2761_s19  }
  0x15   : > { %3532 = sst [smem:[#allocation22_spill]] %s2749_s16  ;;  %p59_p0 = scmp.ne.s32.totalorder %s2737_s13, %s2733_s12 }
  0x16   : > { %p2990_p1 = scmp.eq.s32.totalorder %s1805_s20, 0  ;;  %p252_p2 = scmp.ne.s32.totalorder %s2729_s11, %s2725_s10 }
  0x17   : > { %p253_p3 = scmp.eq.s32.totalorder %s1805_s20, 3  ;;  %p258_p5 = scmp.ne.s32.totalorder %s2725_s10, %s2721_s30 }
  0x18   : > { %s3533_s22 = scalar_select %p2990_p1, 1, 0 }
  0x19   : > { %p2998_p4 = por %p2990_p1, %p59_p0  ;;  %p3004_p6 = por %p253_p3, %p252_p2 }
  0x1a   : > { %p259_p7 = scmp.eq.s32.totalorder %s1806_s21, 3  ;;  %p1807_p8 = scmp.ge.s32.totalorder %s2761_s19, 1 }
  0x1b   : > { %s3534_s23 = scalar_select %p2998_p4, 1, 0 }
  0x1c   : > { %s3535_s24 = scalar_select %p3004_p6, 1, 0 }
  0x1d   : > { %p266_p9 = scmp.lt.s32.totalorder %s2761_s19, 5  ;;  %p3010_p10 = por %p259_p7, %p258_p5 }
  0x1e   : > { %3536 = sst [smem:[#allocation23_spill]] %s3535_s24  ;;  %s2859_s27 = smov [#allocation9]  }
  0x1f   : > { %s3537_s25 = scalar_select %p3010_p10, 1, 0 }
  0x20   : > { %p3014_p11 = pnand %p1807_p8, %p266_p9  ;;  %s278_s28 = sshll.u32 %s2859_s27, 4  ;;  %s279_s28 = int_to_ptr.vmem [resolvable:$true] %s278_s28 }
  0x21   : > { %3538 = sst [smem:[#allocation24_spill]] %s3537_s25  ;;  %s2860_s12 = smov [#allocation12]  }
  0x22   : > { %s3539_s26 = scalar_select %p3014_p11, 1, 0 }
  0x23   : > { %p2035_p12 = pneg %p3014_p11  ;;  %s304_s20 = sshll.u32 %s2860_s12, 4  ;;  %s3026_s20 = int_to_ptr.vmem [resolvable:$true] %s304_s20 }
  0x24   : > { %s3541_s1 = sld [smem:[#allocation25_spill]] }
  0x25   : > { %p3022_p13 = pnand %p2035_p12, %p2990_p1 }
  0x27   : > { %p3036_p2 = pneg %p3022_p13 }
  0x2a   : > { %s2393_s30 = scalar_lea.hbm %s3541_s1, 512 }
  0x2b   : > { %p2394_p0 = scmp.ne.s32.totalorder %s3541_s1, %s2393_s30  ;;  %p2400_p7 = scmp.lt.u32.totalorder %s2393_s30, %s3541_s1 }
  0x2d   : > { %p2396_p3 = pnand %p3036_p2, %p2394_p0 }
  0x2f   : > { %p2397_p5 = pneg %p2396_p3 }
  0x31   : > { %p2402_p8 = pnand %p2400_p7, %p2397_p5 }
  0x33   : > { %2405 = shalt.err (!%p2402_p8)
}
  0x34   : > { %s2406_s25 = scalar_lea.vmem %s279_s28, 512  ;;  %p2414_p6 = scmp.lt.s32.totalorder %s279_s28, %s279_s28 }
  0x35   : > { %p2407_p9 = scmp.ne.s32.totalorder %s279_s28, %s2406_s25  ;;  %p2415_p1 = scmp.lt.s32.totalorder %s2406_s25, %s2406_s25 }
  0x37   : > { %p2409_p12 = pnand %p2407_p9, %p3036_p2  ;;  %p2416_p4 = por %p2415_p1, %p2414_p6 }
  0x39   : > { %p2410_p10 = pneg %p2409_p12 }
  0x3b   : > { %p2417_p11 = pnand %p2416_p4, %p2410_p10 }
  0x3d   : > { %2420 = shalt.err (!%p2417_p11)
}
  0x3e   : > { %s3521_s8 = smov 128   ;;  %s3522_s9 = smov 8  }
  0x3f   : > { %2038 = dma.hbm_to_vmem [thread:$0]  (!%p3022_p13), %s3541_s1, 512, %s279_s28, [#allocation10], %s3521_s8, %s3521_s8, %s3522_s9  }
  0x40   : > { %s2421_s16 = scalar_lea.hbm %s3503_s3, 512 }
  0x41   : > { %p2422_p1 = scmp.ne.s32.totalorder %s3503_s3, %s2421_s16  ;;  %p2428_p10 = scmp.lt.u32.totalorder %s2421_s16, %s3503_s3 }
  0x43   : > { %p2424_p4 = pnand %p2422_p1, %p3036_p2 }
  0x45   : > { %p2425_p6 = pneg %p2424_p4 }
  0x47   : > { %p2430_p11 = pnand %p2428_p10, %p2425_p6 }
  0x49   : > { %2433 = shalt.err (!%p2430_p11)
}
  0x4a   : > { %s2434_s28 = scalar_lea.vmem %s3026_s20, 512  ;;  %p2442_p7 = scmp.lt.s32.totalorder %s3026_s20, %s3026_s20 }
  0x4b   : > { %p2435_p0 = scmp.ne.s32.totalorder %s3026_s20, %s2434_s28  ;;  %p2443_p8 = scmp.lt.s32.totalorder %s2434_s28, %s2434_s28 }
  0x4d   : > { %p2437_p3 = pnand %p2435_p0, %p3036_p2  ;;  %p2444_p9 = por %p2443_p8, %p2442_p7 }
  0x4f   : > { %p2438_p5 = pneg %p2437_p3 }
  0x51   : > { %p2445_p12 = pnand %p2444_p9, %p2438_p5 }
  0x53   : > { %2448 = shalt.err (!%p2445_p12)
}
  0x54   : > { %2044 = dma.hbm_to_vmem [thread:$0]  (!%p3022_p13), %s3503_s3, 512, %s3026_s20, [#allocation13], %s3521_s8, %s3521_s8, %s3522_s9  }
  0x55   : > { %s2863_s6 = smov [#allocation11]   ;;  %s2864_s30 = smov [#allocation14]  }
  0x56   : > { %s291_s16 = sshll.u32 %s2863_s6, 4  ;;  %s326_s24 = sshll.u32 %s2864_s30, 4  ;;  %s292_s16 = int_to_ptr.vmem [resolvable:$true] %s291_s16  ;;  %s327_s24 = int_to_ptr.vmem [resolvable:$true] %s326_s24 }
  0x57   : > { %s3543_s2 = sld [smem:[#allocation26_spill]] }
  0x5d   : > { %s2449_s25 = scalar_lea.hbm %s3543_s2, 512 }
  0x5e   : > { %p2450_p1 = scmp.ne.s32.totalorder %s3543_s2, %s2449_s25  ;;  %p2456_p10 = scmp.lt.u32.totalorder %s2449_s25, %s3543_s2 }
  0x60   : > { %p2452_p4 = pnand %p2450_p1, %p3036_p2 }
  0x62   : > { %p2453_p6 = pneg %p2452_p4 }
  0x64   : > { %p2458_p11 = pnand %p2456_p10, %p2453_p6 }
  0x66   : > { %2461 = shalt.err (!%p2458_p11)
}
  0x67   : > { %s2462_s20 = scalar_lea.vmem %s292_s16, 512  ;;  %p2470_p7 = scmp.lt.s32.totalorder %s292_s16, %s292_s16 }
  0x68   : > { %p2463_p0 = scmp.ne.s32.totalorder %s292_s16, %s2462_s20  ;;  %p2471_p8 = scmp.lt.s32.totalorder %s2462_s20, %s2462_s20 }
  0x6a   : > { %p2465_p3 = pnand %p2463_p0, %p3036_p2  ;;  %p2472_p9 = por %p2471_p8, %p2470_p7 }
  0x6c   : > { %p2466_p5 = pneg %p2465_p3 }
  0x6e   : > { %p2473_p12 = pnand %p2472_p9, %p2466_p5 }
  0x70   : > { %2476 = shalt.err (!%p2473_p12)
}
  0x71   : > { %2041 = dma.hbm_to_vmem [thread:$0]  (!%p3022_p13), %s3543_s2, 512, %s292_s16, [#allocation10], %s3521_s8, %s3521_s8, %s3522_s9  }
  0x72   : > { %s2477_s30 = scalar_lea.hbm %s3507_s7, 512 }
  0x73   : > { %p2478_p1 = scmp.ne.s32.totalorder %s3507_s7, %s2477_s30  ;;  %p2484_p10 = scmp.lt.u32.totalorder %s2477_s30, %s3507_s7 }
  0x75   : > { %p2480_p4 = pnand %p2478_p1, %p3036_p2 }
  0x77   : > { %p2481_p6 = pneg %p2480_p4 }
  0x79   : > { %p2486_p11 = pnand %p2484_p10, %p2481_p6 }
  0x7b   : > { %2489 = shalt.err (!%p2486_p11)
}
  0x7c   : > { %s2490_s4 = scalar_lea.vmem %s327_s24, 512  ;;  %p2498_p7 = scmp.lt.s32.totalorder %s327_s24, %s327_s24 }
  0x7d   : > { %p2491_p0 = scmp.ne.s32.totalorder %s327_s24, %s2490_s4  ;;  %p2499_p8 = scmp.lt.s32.totalorder %s2490_s4, %s2490_s4 }
  0x7f   : > { %p2493_p3 = pnand %p2491_p0, %p3036_p2  ;;  %p2500_p9 = por %p2499_p8, %p2498_p7 }
  0x81   : > { %p2494_p5 = pneg %p2493_p3 }
  0x83   : > { %p2501_p12 = pnand %p2500_p9, %p2494_p5 }
  0x85   : > { %2504 = shalt.err (!%p2501_p12)
}
  0x86   : > { %2047 = dma.hbm_to_vmem [thread:$0]  (!%p3022_p13), %s3507_s7, 512, %s327_s24, [#allocation13], %s3521_s8, %s3521_s8, %s3522_s9  }
  0x87   : > { %s36_s29 = sadd.s32 1, %s2753_s17  ;;  %s39_s27 = sadd.s32 1, %s2757_s18 }
  0x88   : > { %p37_p2 = scmp.ge.s32.totalorder %s36_s29, 2  ;;  %s46_s1 = sadd.s32 1, %s2741_s14 }
  0x89   : > { %p53_p1 = scmp.ne.s32.totalorder %s2741_s14, %s2737_s13  ;;  %p54_p4 = scmp.eq.s32.totalorder %s2761_s19, 0 }
  0x8a   : > { %s3593_s29 = smov (%p37_p2, %s36_s29), 0  ;;  %s3595_s27 = smov (!%p37_p2, %s39_s27), %s2757_s18 }
  0x8b   : > { %s238_s15 = ssub.s32 %s2753_s17, %s3593_s29  ;;  %p41_p6 = scmp.ge.s32.totalorder %s3595_s27, 2 }
  0x8c   : > { %s242_s5 = sadd.s32 1, %s2729_s11  ;;  %p3135_p10 = por %p54_p4, %p53_p1 }
  0x8d   : > { %p2060_p13 = scmp.lt.s32.totalorder %s2761_s19, 4  ;;  %s3597_s27 = smov (%p41_p6, %s3595_s27), 0 }
  0x8e   : > { %s343_s6 = sand.u32 1, %s2741_s14   ;;  %s1861_s30 = sshll.u32 %s2757_s18, 8 }
  0x8f   : > { %s43_s21 = ssub.s32 %s2757_s18, %s3597_s27  ;;  %s1813_s25 = sshll.u32 %s343_s6, 4 }
  0x90   : > { %p44_p11 = scmp.eq.s32.totalorder %s43_s21, 0  ;;  %s239_s12 = sor.u32 %s238_s15, %s43_s21 }
  0x91   : > { %p240_p0 = scmp.eq.s32.totalorder %s239_s12, 0  ;;  %s3155_s8 = scalar_lea.hbm %s3500_s0, %s1861_s30 }
  0x92   : > { %s3147_s28 = scalar_select %p44_p11, %s2741_s14, %s46_s1  }
  0x93   : > { %s3150_s4 = scalar_select %p240_p0, %s2729_s11, %s242_s5  }
  0x94   : > { %s347_s9 = scalar_lea.vmem [#allocation6], %s1813_s25  ;;  %p3161_p3 = pnand %p2060_p13, %p3135_p10 }
  0x95   : > { %s354_s2 = sshll.u32 %s347_s9, 4  ;;  %s3167_s1 = scalar_lea.sflag [#allocation7], %s343_s6  ;;  %s3165_s2 = int_to_ptr.vmem [resolvable:$true] %s354_s2 }
  0x96   : > { %s2505_s5 = scalar_lea.hbm %s3155_s8, 256  ;;  %p2507_p7 = pneg %p3161_p3 }
  0x97   : > { %p2506_p5 = scmp.ne.s32.totalorder %s3155_s8, %s2505_s5  ;;  %s2510_s30 = scalar_lea.hbm %s3500_s0, 512 }
  0x98   : > { %p2511_p12 = scmp.lt.u32.totalorder %s3155_s8, %s3500_s0  ;;  %p2512_p2 = scmp.lt.u32.totalorder %s2510_s30, %s2505_s5 }
  0x99   : > { %p2508_p8 = pnand %p2507_p7, %p2506_p5  ;;  %p2514_p4 = scmp.lt.u32.totalorder %s2505_s5, %s3155_s8 }
  0x9a   : > { %p2513_p1 = por %p2512_p2, %p2511_p12 }
  0x9b   : > { %p2509_p9 = pneg %p2508_p8 }
  0x9c   : > { %p2515_p6 = por %p2514_p4, %p2513_p1 }
  0x9e   : > { %p2516_p10 = pnand %p2515_p6, %p2509_p9 }
  0xa0   : > { %2519 = shalt.err (!%p2516_p10)
}
  0xa1   : > { %s2520_s6 = scalar_lea.vmem %s3165_s2, 256  ;;  %s2865_s25 = smov [#allocation6]  }
  0xa2   : > { %p2521_p13 = scmp.ne.s32.totalorder %s3165_s2, %s2520_s6  ;;  %s2525_s16 = sshll.u32 %s2865_s25, 4  ;;  %s2526_s16 = int_to_ptr.vmem [resolvable:$false] %s2525_s16 }
  0xa3   : > { %s2527_s20 = scalar_lea.vmem %s2526_s16, 512  ;;  %p2528_p5 = scmp.lt.s32.totalorder %s3165_s2, %s2526_s16 }
  0xa4   : > { %p2523_p11 = pnand %p2521_p13, %p2507_p7  ;;  %p2529_p8 = scmp.lt.s32.totalorder %s2527_s20, %s2520_s6 }
  0xa6   : > { %p2524_p0 = pneg %p2523_p11  ;;  %p2530_p12 = por %p2529_p8, %p2528_p5 }
  0xa8   : > { %p2531_p2 = pnand %p2530_p12, %p2524_p0 }
  0xaa   : > { %2534 = shalt.err (!%p2531_p2)
}
  0xab   : > { %s3546_s5 = smov 8   ;;  %s3547_s9 = smov 128  }
  0xac   : > { %2051 = dma.hbm_to_vmem [thread:$0]  (!%p3161_p3), %s3155_s8, 256, %s3165_s2, %s3167_s1, %s3547_s9, %s3547_s9, %s3546_s5  }
  0xad   : > { %p3548_p7 = scmp.ne.s32.totalorder %s3539_s26, 0 }
  0xae   : > { %s368_s24 = sand.u32 (!%p3548_p7), 1, %s2737_s13   ;;  %p3549_p9 = scmp.ne.s32.totalorder (!%p3548_p7), %s3534_s23, 0 }
  0xaf   : > { %366 = sbr.rel (%p3548_p7) target bundleno = 3806 (0xede), region = 56  ;;  %s3201_s30 = sshll.u32 (!%p3548_p7), %s368_s24, 4 }
  0xb0   : > { %s369_s21 = scalar_lea.sflag (!%p3548_p7), [#allocation7], %s368_s24  ;;  %s372_s12 = scalar_lea.vmem (!%p3548_p7), [#allocation6], %s3201_s30 }
  0xb6   : > { %2704 = dma.done.wait (%p3549_p9), %s369_s21, 256  }
  0xb7   : > { %2706 = vsyncadd (%p3549_p9), %s369_s21, 4294967040  ;;  %p3550_p1 = scmp.ne.s32.totalorder %s3533_s22, 0 }
  0xb9   : > { %2708 = dma.done.wait (%p3550_p1), [#allocation10], 1024  }
  0xba   : > { %2710 = vsyncadd (%p3550_p1), [#allocation10], 4294966272 }
  0xbb   : > { %2712 = dma.done.wait (%p3550_p1), [#allocation13], 1024  }
  0xbc   : > { %2714 = vsyncadd (%p3550_p1), [#allocation13], 4294966272  ;;  %s420_s2 = sand.u32 1, %s2725_s10   ;;  %s3551_s8 = sld [smem:[#allocation21_spill]] }
  0xbd   : > { %s3219_s26 = sshll.u32 %s420_s2, 3 }
  0xbe   : > { %s422_s23 = scalar_lea.vmem [#allocation15], %s3219_s26 }
  0xc2   : > { %p1823_p3 = scmp.ne.s32.totalorder %s3551_s8, 0 }
  0xc3   : > { %v429_v0 = vld [vmem:[#allocation9] sm:$0xff] (!%p1823_p3)  ;;  %v430_v1 = vld [vmem:[#allocation9 + $0x8] sm:$0xff] (!%p1823_p3)  ;;  %v431_v2 = vld [vmem:[#allocation9 + $0x10] sm:$0xff] (!%p1823_p3)  ;;  %vm440_vm0 = vcmask (!%p1823_p3), 261120   ;;  %s3552_s1 = sld [smem:[#allocation27_spill]] (!%p1823_p3)  ;;  %s3553_s16 = sld [smem:[#allocation28_spill]] (!%p1823_p3) }
  0xc4   : > { %426 = sbr.rel (%p1823_p3) target bundleno = 430 (0x1ae), region = 80  ;;  %v1985_v3 = vpack.c.bf16 (!%p1823_p3), %v430_v1, %v429_v0  ;;  %v432_v4 = vld [vmem:[#allocation9 + $0x18] sm:$0xff] (!%p1823_p3)  ;;  %v427_v5 = vld [vmem:[%s372_s12] sm:$0xff] (!%p1823_p3)  ;;  %v527_v8 = vld [vmem:[#allocation11 + $0x8] sm:$0xff] (!%p1823_p3)  ;;  %s3554_s9 = sld [smem:[#allocation29_spill]] (!%p1823_p3) }
  0xc5   : > { %v526_v6 = vld [vmem:[#allocation11] sm:$0xff] (!%p1823_p3)  ;;  %v1989_v7 = vpack.c.bf16 (!%p1823_p3), %v432_v4, %v431_v2  ;;  %1909 = vmatprep.mubr.msk.f32.mxu0 (!%p1823_p3), %vm440_vm0, %v427_v5  ;;  %1920 = vmatprep.mubr.msk.f32.mxu1 (!%p1823_p3), %vm440_vm0, %v427_v5  ;;  %v615_v11 = vld [vmem:[#allocation12 + $0x8] sm:$0xff] (!%p1823_p3)  ;;  %v528_v12 = vld [vmem:[#allocation11 + $0x10] sm:$0xff] (!%p1823_p3) }
  0xc6   : > { %v614_v9 = vld [vmem:[#allocation12] sm:$0xff] (!%p1823_p3)  ;;  %1986 = vmatprep.subr.bf16.mxu0 (!%p1823_p3), %v1985_v3  ;;  %v1993_v10 = vpack.c.bf16 (!%p1823_p3), %v527_v8, %v526_v6  ;;  %v529_v13 = vld [vmem:[#allocation11 + $0x18] sm:$0xff] (!%p1823_p3)  ;;  %v616_v16 = vld [vmem:[#allocation12 + $0x10] sm:$0xff] (!%p1823_p3) }
  0xc7   : > { %1988 = vmatpush3.bf16.msra.mxu0 (!%p1823_p3), %v1985_v3  ;;  %v1997_v14 = vpack.c.bf16 (!%p1823_p3), %v529_v13, %v528_v12  ;;  %v2001_v15 = vpack.c.bf16 (!%p1823_p3), %v615_v11, %v614_v9  ;;  %v617_v17 = vld [vmem:[#allocation12 + $0x18] sm:$0xff] (!%p1823_p3) }
  0xc8   : > { %1990 = vmatprep.subr.bf16.mxu0 (!%p1823_p3), %v1989_v7  ;;  %1994 = vmatprep.subr.bf16.mxu1 (!%p1823_p3), %v1993_v10  ;;  %v428_v18 = vld [vmem:[%s372_s12 + $0x8] sm:$0xff] (!%p1823_p3)  ;;  %v2005_v19 = vpack.c.bf16 (!%p1823_p3), %v617_v17, %v616_v16 }
  0xc9   : > { %1996 = vmatpush3.bf16.msra.mxu1 (!%p1823_p3), %v1993_v10  ;;  %v1824_v20 = vld [vmem:[%s3552_s1] ss:$0 sm:$0xff] (!%p1823_p3) }
  0xca   : > { %1998 = vmatprep.subr.bf16.mxu1 (!%p1823_p3), %v1997_v14  ;;  %v1827_v22 = vld [vmem:[%s3553_s16] ss:$0 sm:$0xff] (!%p1823_p3) }
  0xcb   : > { %1992 = vmatpush3.bf16.msra.mxu0 %v1989_v7  ;;  %v1830_v32 = vld [vmem:[%s3554_s9] ss:$0 sm:$0xff] }
  0xcc   : > { %2002 = vmatprep.subr.bf16.mxu0 %v2001_v15 }
  0xcd   : > { %2000 = vmatpush3.bf16.msra.mxu1 %v1997_v14 }
  0xce   : > { %1910 = vmatmul.mubr.msk.f32.vlgmr.msra.gmra.mrb[0].mxu0 %vm440_vm0, %v428_v18 }
  0xcf   : > { %2004 = vmatpush3.bf16.msra.mxu0 %v2001_v15  ;;  %1931 = vmatprep.mubr.msk.f32.mxu0 %vm440_vm0, %v427_v5 }
  0xd0   : > { %2006 = vmatprep.subr.bf16.mxu0 %v2005_v19  ;;  %1921 = vmatmul.mubr.msk.f32.vlgmr.msra.gmra.mrb[0].mxu1 %vm440_vm0, %v428_v18 }
  0xd3   : > { %2008 = vmatpush3.bf16.msra.mxu0 %v2005_v19 }
  0xd6   : > { %1932 = vmatmul.mubr.msk.f32.vlgmr.msra.gmra.mrb[2].mxu0 %vm440_vm0, %v428_v18 }
 0x1a1   : > { %v1911_v21 = vpop.f32.mrb[0].mxu0 }
 0x1a2   : > { %v519_v23 = vadd.f32 %v1911_v21, %v1824_v20  ;;  %v513_v24 = vpop.f32.mrb[1].mxu0 }
 0x1a3   : > { %v514_v25 = vadd.f32 %v1824_v20, %v513_v24  ;;  %v1922_v26 = vpop.f32.mrb[0].mxu1 }
 0x1a4   : > { %v523_v27 = vmul.f32 0.35355338, %v519_v23  ;;  %v609_v28 = vadd.f32 %v1922_v26, %v1827_v22  ;;  %v603_v29 = vpop.f32.mrb[1].mxu1 }
 0x1a5   : > { %v522_v30 = vmul.f32 0.35355338, %v514_v25  ;;  %v604_v31 = vadd.f32 %v1827_v22, %v603_v29 }
 0x1a6   : > { %525 = vst.msk [vmem:[#allocation2 + $0x8] sm:$0xff] %vm440_vm0, %v523_v27  ;;  %613 = vst.msk [vmem:[#allocation3 + $0x8] sm:$0xff] %vm440_vm0, %v609_v28 }
 0x1a7   : > { %524 = vst.msk [vmem:[#allocation2] sm:$0xff] %vm440_vm0, %v522_v30  ;;  %612 = vst.msk [vmem:[#allocation3] sm:$0xff] %vm440_vm0, %v604_v31 }
 0x1a9   : > { %v1933_v33 = vpop.f32.mrb[2].mxu0 }
 0x1aa   : > { %v697_v34 = vadd.f32 %v1933_v33, %v1830_v32  ;;  %v691_v35 = vpop.f32.mrb[3].mxu0 }
 0x1ab   : > { %v692_v36 = vadd.f32 %v1830_v32, %v691_v35 }
 0x1ac   : > { %701 = vst.msk [vmem:[#allocation4 + $0x8] sm:$0xff] %vm440_vm0, %v697_v34 }
 0x1ad   : > { %700 = vst.msk [vmem:[#allocation4] sm:$0xff] %vm440_vm0, %v692_v36 }
 0x1ae PF: > { %s3555_s24 = sld [smem:[#allocation21_spill]]  ;;  %v705_v37 = vlaneseq  ;;  %v3258_v42 = vmov 0.0   ;;  %v3260_v43 = vmov 0.0  }
 0x1b0   : > { %v706_v40 = vshrl.u32 %v705_v37, 7 }
 0x1b4   : > { %s1833_s30 = sshll.u32 %s3555_s24, 3  ;;  %s3250_s21 = sadd.s32 1, %s3555_s24 }
 0x1b5   : > { %v707_v38 = vstv %s1833_s30  ;;  %s703_s12 = scalar_lea.vmem [#allocation2], %s1833_s30  ;;  %p1834_p4 = scmp.le.s32.totalorder %s3250_s21, 0 }
 0x1b6   : > { %v3252_v39 = vld [vmem:[%s703_s12] sm:$0xff]  ;;  %v3255_v41 = vadd.s32 %v707_v38, %v706_v40  ;;  %v2763_v44 = vmov (!%p1834_p4), 0.0   ;;  %v2767_v45 = vmov (!%p1834_p4), 0.0   ;;  %v2771_v46 = vmov (!%p1834_p4), -1e+30   ;;  %s3264_s8 = smov (!%p1834_p4), 0  }
 0x1b7   : > { %1683 = sbr.rel (%p1834_p4) target bundleno = 1040 (0x410), region = 152 }
 0x1be LB: >> { %v2866_v47 = vmov 0.0   ;;  %vm2867_vm1 = vmmov 0   ;;  %s1835_s22 = sshll.u32 %s2777_s8, 3  ;;  %vm724_vm2 = vcmask 64512   ;;  %v802_v49 = vand.u32 127, %v705_v37  ;;  %s713_s8 = sadd.s32 1, %s2777_s8   ;;  %s2777_s8 = sphi %s3264_s8, %s713_s8   ;;  %v2773_v46 = vphi %v2771_v46, %v2772_v46   ;;  %v2769_v45 = vphi %v2767_v45, %v2768_v45   ;;  %v2765_v44 = vphi %v2763_v44, %v2764_v44  }
 0x1bf   : >> { %1934 = vmatprep.subr.mxu0 %v2866_v47  ;;  %1936 = vmatprep.mubr.msk.f32.mxu0 %vm2867_vm1, %v2866_v47  ;;  %s720_s15 = scalar_lea.vmem [#allocation3], %s1835_s22  ;;  %v803_v50 = vstv %s1835_s22  ;;  %s722_s1 = scalar_lea.vmem [#allocation4], %s1835_s22 }
 0x1c0   : >> { %1939 = vmatprep.subr.mxu1 %v2866_v47  ;;  %1941 = vmatprep.mubr.msk.f32.mxu1 %vm2867_vm1, %v2866_v47  ;;  %v721_v48 = vld [vmem:[%s720_s15] sm:$0xff]  ;;  %v804_v51 = vadd.s32 %v803_v50, %v802_v49  ;;  %p712_p6 = scmp.ge.s32.totalorder %s713_s8, %s3250_s21 }
 0x1c1   : >> { %1935 = vmatpush3.xpose.msk.msra.mxu0 %vm724_vm2, %v721_v48  ;;  %v723_v56 = vld [vmem:[%s722_s1] sm:$0xff] }
 0x1c2   : >> { %vm805_vm3 = vcmp.ge.s32.totalorder %v3255_v41, %v804_v51  ;;  %1940 = vmatpush3.msra.mxu1 %v723_v56 }
 0x1c4   : >> { %1937 = vmatmul.mubr.msk.f32.vlgmr.msra.gmra.mrb[0].mxu0 %vm724_vm2, %v3252_v39 }
 0x297   : >> { %v797_v52 = vpop.f32.mrb[0].mxu0 }
 0x298   : >> { %v806_v53 = vsel %vm805_vm3, %v797_v52, -1e+30  ;;  %v1938_v54 = vpop.f32.mrb[1].mxu0 }
 0x299   : >> { %v807_v55 = vsel %vm724_vm2, %v806_v53, -inf }
 0x29a   : >> { %808 = vmax.xlane.f32.xlu0 %v807_v55 }
 0x327   : >> { %v809_v57 = vpop.xlane.xlu0 %808 }
 0x328   : >> { %v810_v58 = vmax.f32 %v2773_v46, %v809_v57  }
 0x32a   : >> { %v811_v59 = vsub.f32 %v2773_v46, %v810_v58  ;;  %v814_v60 = vsub.f32 %v806_v53, %v810_v58  ;;  %v2772_v46 = vmov %v810_v58  }
 0x32c   : >> { %v815_v61 = vmul.f32 1.442695, %v814_v60  ;;  %v812_v0 = vmul.f32 1.442695, %v811_v59 }
 0x32e   : >> { %2369 = vpow2.f32 %v815_v61 }
 0x32f   : >> { %2371 = vpow2.f32 %v812_v0 }
 0x338   : >> { %v2370_v62 = vpop.eup %2369 }
 0x339   : >> { %1942 = vmatmul.mubr.msk.f32.vlgmr.msra.gmra.mrb[0].mxu1 %vm724_vm2, %v2370_v62  ;;  %v818_v63 = vsel %vm724_vm2, %v2370_v62, 0.0  ;;  %v2372_v1 = vpop.eup %2371 }
 0x33a   : >> { %819 = vadd.xlane.f32.xlu0 %v818_v63  ;;  %v817_v2 = vmul.f32 %v2769_v45, %v2372_v1  ;;  %v822_v5 = vmul.f32 %v2765_v44, %v2372_v1 }
 0x3c7   : >> { %v820_v3 = vpop.xlane.xlu0 %819 }
 0x3c8   : >> { %v821_v4 = vadd.f32 %v820_v3, %v817_v2  }
 0x3ca   : >> { %v2768_v45 = vmov %v821_v4   ;;  %v3557_v43 = vmov (%p712_p6), %v821_v4 }
 0x409   : > { %715 = sbr.rel (!%p712_p6) target bundleno = 446 (0x1be), region = 158 }
 0x40c   : >> { %v892_v6 = vpop.f32.mrb[0].mxu1 }
 0x40d   : >> { %v896_v7 = vadd.f32 %v892_v6, %v822_v5   ;;  %v1943_v8 = vpop.f32.mrb[1].mxu1 }
 0x40f   : >> { %v2764_v44 = vmov %v896_v7   ;;  %v3556_v42 = vmov (%p712_p6), %v896_v7 }
 0x410 PF: > { %2373 = vrcp.f32 %v2785_v43  ;;  %vm899_vm4 = vcmask 64512   ;;  %v3289_v11 = vmov 0.0   ;;  %v3291_v12 = vmov 0.0   ;;  %s3301_s6 = smov (!%p1834_p4), 0   ;;  %v2785_v43 = vphi %v3260_v43, %v3557_v43   ;;  %v2781_v42 = vphi %v3258_v42, %v3556_v42  }
 0x411   : > { %v3295_v13 = vmov (!%p1834_p4), 0.0   ;;  %v3297_v14 = vmov (!%p1834_p4), 0.0   ;;  %v3299_v15 = vmov (!%p1834_p4), -1e+30  }
 0x417   : > { %1697 = sbr.rel (%p1834_p4) target bundleno = 1764 (0x6e4), region = 163 }
 0x41a   : > { %v2374_v9 = vpop.eup %2373 }
 0x41b   : > { %v898_v10 = vmul.f32 %v2781_v42, %v2374_v9 }
 0x41d   : > { %900 = vst.msk [vmem:[#allocation5] sm:$0xff] %vm899_vm4, %v898_v10 }
 0x41e LB: >> { %v2868_v16 = vmov 0.0   ;;  %vm2869_vm5 = vmmov 0   ;;  %s1840_s25 = sshll.u32 %s2801_s6, 3  ;;  %s2870_s20 = smov 120   ;;  %v996_v20 = vand.u32 127, %v705_v37  ;;  %s2801_s6 = sphi %s3301_s6, %s904_s6   ;;  %v2797_v15 = vphi %v3299_v15, %v3560_v15   ;;  %v2793_v14 = vphi %v3297_v14, %v3559_v14   ;;  %v2789_v13 = vphi %v3295_v13, %v3558_v13  }
 0x41f   : >> { %1944 = vmatprep.subr.mxu0 %v2868_v16  ;;  %1946 = vmatprep.mubr.msk.f32.mxu0 %vm2869_vm5, %v2868_v16  ;;  %s911_s16 = scalar_lea.vmem [#allocation3], %s1840_s25  ;;  %v997_v21 = vstv %s1840_s25  ;;  %s913_s5 = scalar_lea.vmem [#allocation4], %s1840_s25 }
 0x420   : >> { %1949 = vmatprep.subr.mxu1 %v2868_v16  ;;  %1951 = vmatprep.mubr.msk.f32.mxu1 %vm2869_vm5, %v2868_v16  ;;  %v912_v17 = vld [vmem:[%s911_s16] sm:$0xff]  ;;  %v998_v22 = vadd.s32 %v997_v21, %v996_v20  ;;  %s904_s6 = sadd.s32 1, %s2801_s6  }
 0x421   : >> { %919 = vrot.lane.b32.xlu0 %v912_v17, %s2870_s20  ;;  %v914_v27 = vld [vmem:[%s913_s5] sm:$0xff]  ;;  %p903_p10 = scmp.ge.s32.totalorder %s904_s6, %s3250_s21 }
 0x422   : >> { %vm999_vm6 = vcmp.ge.s32.totalorder %v3255_v41, %v998_v22 }
 0x425   : >> { %916 = vrot.lane.b32.xlu0 %v3252_v39, %s2870_s20 }
 0x493   : >> { %v920_v18 = vpop.permute.xlu0 %919 }
 0x494   : >> { %1945 = vmatpush3.xpose.msk.msra.mxu0 %vm899_vm4, %v920_v18 }
 0x497   : >> { %v917_v19 = vpop.permute.xlu0 %916 }
 0x498   : >> { %1947 = vmatmul.mubr.msk.f32.vlgmr.msra.gmra.mrb[0].mxu0 %vm899_vm4, %v917_v19 }
 0x56b   : >> { %v991_v23 = vpop.f32.mrb[0].mxu0 }
 0x56c   : >> { %v1000_v24 = vsel %vm999_vm6, %v991_v23, -1e+30  ;;  %v1948_v25 = vpop.f32.mrb[1].mxu0 }
 0x56d   : >> { %v1001_v26 = vsel %vm899_vm4, %v1000_v24, -inf }
 0x56e   : >> { %1002 = vmax.xlane.f32.xlu1 %v1001_v26 }
 0x57f   : >> { %1018 = vrot.lane.b32.xlu1 %v914_v27, %s2870_s20 }
 0x5fb   : >> { %v1003_v28 = vpop.xlane.xlu1 %1002 }
 0x5fc   : >> { %v1004_v29 = vmax.f32 %v2797_v15, %v1003_v28  }
 0x5fe   : >> { %v1005_v30 = vsub.f32 %v2797_v15, %v1004_v29  ;;  %v1008_v31 = vsub.f32 %v1000_v24, %v1004_v29  ;;  %v3560_v15 = vmov %v1004_v29 }
 0x5ff   : >> { %v1019_v32 = vpop.permute.xlu1 %1018 }
 0x600   : >> { %v1009_v33 = vmul.f32 1.442695, %v1008_v31  ;;  %1950 = vmatpush3.msra.mxu1 %v1019_v32  ;;  %v1006_v36 = vmul.f32 1.442695, %v1005_v30 }
 0x602   : >> { %2375 = vpow2.f32 %v1009_v33 }
 0x603   : >> { %2377 = vpow2.f32 %v1006_v36 }
 0x60c   : >> { %v2376_v34 = vpop.eup %2375 }
 0x60d   : >> { %1952 = vmatmul.mubr.msk.f32.vlgmr.msra.gmra.mrb[0].mxu1 %vm899_vm4, %v2376_v34  ;;  %v1012_v35 = vsel %vm899_vm4, %v2376_v34, 0.0  ;;  %v2378_v38 = vpop.eup %2377 }
 0x60e   : >> { %1013 = vadd.xlane.f32.xlu0 %v1012_v35  ;;  %v1011_v40 = vmul.f32 %v2793_v14, %v2378_v38  ;;  %v1016_v44 = vmul.f32 %v2789_v13, %v2378_v38 }
 0x69b   : >> { %v1014_v42 = vpop.xlane.xlu0 %1013 }
 0x69c   : >> { %v1015_v43 = vadd.f32 %v1014_v42, %v1011_v40  }
 0x69e   : >> { %v3559_v14 = vmov %v1015_v43  ;;  %v3562_v12 = vmov (%p903_p10), %v1015_v43 }
 0x6dd   : > { %906 = sbr.rel (!%p903_p10) target bundleno = 1054 (0x41e), region = 169 }
 0x6e0   : >> { %v1090_v45 = vpop.f32.mrb[0].mxu1 }
 0x6e1   : >> { %v1094_v46 = vadd.f32 %v1090_v45, %v1016_v44   ;;  %v1953_v47 = vpop.f32.mrb[1].mxu1 }
 0x6e3   : >> { %v3558_v13 = vmov %v1094_v46  ;;  %v3561_v11 = vmov (%p903_p10), %v1094_v46 }
 0x6e4 PF: > { %2379 = vrcp.f32 %v2809_v12  ;;  %s2871_s9 = smov 8   ;;  %vm1101_vm7 = vcmask 130112   ;;  %v3334_v51 = vmov 0.0   ;;  %v3336_v52 = vmov 0.0   ;;  %s3346_s24 = smov (!%p1834_p4), 0   ;;  %v2809_v12 = vphi %v3291_v12, %v3562_v12   ;;  %v2805_v11 = vphi %v3289_v11, %v3561_v11  }
 0x6e5   : > { %v3340_v53 = vmov (!%p1834_p4), 0.0   ;;  %v3342_v54 = vmov (!%p1834_p4), 0.0   ;;  %v3344_v55 = vmov (!%p1834_p4), -1e+30  }
 0x6ee   : > { %v2380_v48 = vpop.eup %2379 }
 0x6ef   : > { %v1096_v49 = vmul.f32 %v2805_v11, %v2380_v48 }
 0x6f1   : > { %1098 = vrot.lane.b32.xlu0 %v1096_v49, %s2871_s9 }
 0x75e   : > { %1711 = sbr.rel (%p1834_p4) target bundleno = 2603 (0xa2b), region = 174 }
 0x763   : > { %v1099_v50 = vpop.permute.xlu0 %1098 }
 0x764   : > { %1102 = vst.msk [vmem:[#allocation5] sm:$0xff] %vm1101_vm7, %v1099_v50 }
 0x765 LB: >> { %v2872_v56 = vmov 0.0   ;;  %vm2873_vm8 = vmmov 0   ;;  %s1845_s30 = sshll.u32 %s2825_s24, 3  ;;  %s2874_s8 = smov 112   ;;  %v1198_v60 = vand.u32 127, %v705_v37  ;;  %s2825_s24 = sphi %s3346_s24, %s1106_s24   ;;  %v2821_v55 = vphi %v3344_v55, %v3565_v55   ;;  %v2817_v54 = vphi %v3342_v54, %v3564_v54   ;;  %v2813_v53 = vphi %v3340_v53, %v3563_v53  }
 0x766   : >> { %1954 = vmatprep.subr.mxu0 %v2872_v56  ;;  %1956 = vmatprep.mubr.msk.f32.mxu0 %vm2873_vm8, %v2872_v56  ;;  %s1113_s12 = scalar_lea.vmem [#allocation3], %s1845_s30  ;;  %v1199_v61 = vstv %s1845_s30  ;;  %s1115_s22 = scalar_lea.vmem [#allocation4], %s1845_s30 }
 0x767   : >> { %1959 = vmatprep.subr.mxu1 %v2872_v56  ;;  %1961 = vmatprep.mubr.msk.f32.mxu1 %vm2873_vm8, %v2872_v56  ;;  %v1114_v57 = vld [vmem:[%s1113_s12] sm:$0xff]  ;;  %v1200_v62 = vadd.s32 %v1199_v61, %v1198_v60  ;;  %s1106_s24 = sadd.s32 1, %s2825_s24  }
 0x768   : >> { %1121 = vrot.lane.b32.xlu0 %v1114_v57, %s2874_s8  ;;  %v1116_v3 = vld [vmem:[%s1115_s22] sm:$0xff]  ;;  %p1105_p13 = scmp.ge.s32.totalorder %s1106_s24, %s3250_s21 }
 0x769   : >> { %vm1201_vm9 = vcmp.ge.s32.totalorder %v3255_v41, %v1200_v62 }
 0x76c   : >> { %1118 = vrot.lane.b32.xlu0 %v3252_v39, %s2874_s8 }
 0x7da   : >> { %v1122_v58 = vpop.permute.xlu0 %1121 }
 0x7db   : >> { %1955 = vmatpush3.xpose.msk.msra.mxu0 %vm899_vm4, %v1122_v58 }
 0x7de   : >> { %v1119_v59 = vpop.permute.xlu0 %1118 }
 0x7df   : >> { %1957 = vmatmul.mubr.msk.f32.vlgmr.msra.gmra.mrb[0].mxu0 %vm899_vm4, %v1119_v59 }
 0x8b2   : >> { %v1193_v63 = vpop.f32.mrb[0].mxu0 }
 0x8b3   : >> { %v1202_v0 = vsel %vm1201_vm9, %v1193_v63, -1e+30  ;;  %v1958_v1 = vpop.f32.mrb[1].mxu0 }
 0x8b4   : >> { %v1203_v2 = vsel %vm899_vm4, %v1202_v0, -inf }
 0x8b5   : >> { %1204 = vmax.xlane.f32.xlu1 %v1203_v2 }
 0x8c6   : >> { %1220 = vrot.lane.b32.xlu1 %v1116_v3, %s2874_s8 }
 0x942   : >> { %v1205_v4 = vpop.xlane.xlu1 %1204 }
 0x943   : >> { %v1206_v5 = vmax.f32 %v2821_v55, %v1205_v4  }
 0x945   : >> { %v1207_v6 = vsub.f32 %v2821_v55, %v1206_v5  ;;  %v1210_v7 = vsub.f32 %v1202_v0, %v1206_v5  ;;  %v3565_v55 = vmov %v1206_v5 }
 0x946   : >> { %v1221_v8 = vpop.permute.xlu1 %1220 }
 0x947   : >> { %v1211_v9 = vmul.f32 1.442695, %v1210_v7  ;;  %1960 = vmatpush3.msra.mxu1 %v1221_v8  ;;  %v1208_v12 = vmul.f32 1.442695, %v1207_v6 }
 0x949   : >> { %2381 = vpow2.f32 %v1211_v9 }
 0x94a   : >> { %2383 = vpow2.f32 %v1208_v12 }
 0x953   : >> { %v2382_v10 = vpop.eup %2381 }
 0x954   : >> { %1962 = vmatmul.mubr.msk.f32.vlgmr.msra.gmra.mrb[0].mxu1 %vm899_vm4, %v2382_v10  ;;  %v1214_v11 = vsel %vm899_vm4, %v2382_v10, 0.0  ;;  %v2384_v13 = vpop.eup %2383 }
 0x955   : >> { %1215 = vadd.xlane.f32.xlu0 %v1214_v11  ;;  %v1213_v14 = vmul.f32 %v2817_v54, %v2384_v13  ;;  %v1218_v17 = vmul.f32 %v2813_v53, %v2384_v13 }
 0x9e2   : >> { %v1216_v15 = vpop.xlane.xlu0 %1215 }
 0x9e3   : >> { %v1217_v16 = vadd.f32 %v1216_v15, %v1213_v14  }
 0x9e5   : >> { %v3564_v54 = vmov %v1217_v16  ;;  %v3567_v52 = vmov (%p1105_p13), %v1217_v16 }
 0xa24   : > { %1108 = sbr.rel (!%p1105_p13) target bundleno = 1893 (0x765), region = 180 }
 0xa27   : >> { %v1292_v18 = vpop.f32.mrb[0].mxu1 }
 0xa28   : >> { %v1296_v19 = vadd.f32 %v1292_v18, %v1218_v17   ;;  %v1963_v20 = vpop.f32.mrb[1].mxu1 }
 0xa2a   : >> { %v3563_v53 = vmov %v1296_v19  ;;  %v3566_v51 = vmov (%p1105_p13), %v1296_v19 }
 0xa2b PF: > { %2385 = vrcp.f32 %v2833_v52  ;;  %s2875_s15 = smov 16   ;;  %vm1303_vm10 = vcmask 195712   ;;  %v3379_v24 = vmov 0.0   ;;  %v3381_v25 = vmov 0.0   ;;  %s3391_s1 = smov (!%p1834_p4), 0   ;;  %v2833_v52 = vphi %v3336_v52, %v3567_v52   ;;  %v2829_v51 = vphi %v3334_v51, %v3566_v51  }
 0xa2c   : > { %v3385_v26 = vmov (!%p1834_p4), 0.0   ;;  %v3387_v27 = vmov (!%p1834_p4), 0.0   ;;  %v3389_v28 = vmov (!%p1834_p4), -1e+30  }
 0xa35   : > { %v2386_v21 = vpop.eup %2385 }
 0xa36   : > { %v1298_v22 = vmul.f32 %v2829_v51, %v2386_v21 }
 0xa38   : > { %1300 = vrot.lane.b32.xlu0 %v1298_v22, %s2875_s15 }
 0xaa5   : > { %1725 = sbr.rel (%p1834_p4) target bundleno = 3442 (0xd72), region = 185 }
 0xaaa   : > { %v1301_v23 = vpop.permute.xlu0 %1300 }
 0xaab   : > { %1304 = vst.msk [vmem:[#allocation5] sm:$0xff] %vm1303_vm10, %v1301_v23 }
 0xaac LB: >> { %v2876_v29 = vmov 0.0   ;;  %vm2877_vm11 = vmmov 0   ;;  %s1850_s6 = sshll.u32 %s2849_s1, 3  ;;  %s2878_s16 = smov 104   ;;  %v1400_v33 = vand.u32 127, %v705_v37  ;;  %s2849_s1 = sphi %s3391_s1, %s1308_s1   ;;  %v2845_v28 = vphi %v3389_v28, %v3570_v28   ;;  %v2841_v27 = vphi %v3387_v27, %v3569_v27   ;;  %v2837_v26 = vphi %v3385_v26, %v3568_v26  }
 0xaad   : >> { %1964 = vmatprep.subr.mxu0 %v2876_v29  ;;  %1966 = vmatprep.mubr.msk.f32.mxu0 %vm2877_vm11, %v2876_v29  ;;  %s1315_s25 = scalar_lea.vmem [#allocation3], %s1850_s6  ;;  %v1401_v34 = vstv %s1850_s6  ;;  %s1317_s20 = scalar_lea.vmem [#allocation4], %s1850_s6 }
 0xaae   : >> { %1969 = vmatprep.subr.mxu1 %v2876_v29  ;;  %1971 = vmatprep.mubr.msk.f32.mxu1 %vm2877_vm11, %v2876_v29  ;;  %v1316_v30 = vld [vmem:[%s1315_s25] sm:$0xff]  ;;  %v1402_v35 = vadd.s32 %v1401_v34, %v1400_v33  ;;  %s1308_s1 = sadd.s32 1, %s2849_s1  }
 0xaaf   : >> { %1323 = vrot.lane.b32.xlu0 %v1316_v30, %s2878_s16  ;;  %v1318_v43 = vld [vmem:[%s1317_s20] sm:$0xff]  ;;  %p1307_p11 = scmp.ge.s32.totalorder %s1308_s1, %s3250_s21 }
 0xab0   : >> { %vm1403_vm12 = vcmp.ge.s32.totalorder %v3255_v41, %v1402_v35 }
 0xab3   : >> { %1320 = vrot.lane.b32.xlu0 %v3252_v39, %s2878_s16 }
 0xb21   : >> { %v1324_v31 = vpop.permute.xlu0 %1323 }
 0xb22   : >> { %1965 = vmatpush3.xpose.msk.msra.mxu0 %vm899_vm4, %v1324_v31 }
 0xb25   : >> { %v1321_v32 = vpop.permute.xlu0 %1320 }
 0xb26   : >> { %1967 = vmatmul.mubr.msk.f32.vlgmr.msra.gmra.mrb[0].mxu0 %vm899_vm4, %v1321_v32 }
 0xbf9   : >> { %v1395_v36 = vpop.f32.mrb[0].mxu0 }
 0xbfa   : >> { %v1404_v38 = vsel %vm1403_vm12, %v1395_v36, -1e+30  ;;  %v1968_v40 = vpop.f32.mrb[1].mxu0 }
 0xbfb   : >> { %v1405_v42 = vsel %vm899_vm4, %v1404_v38, -inf }
 0xbfc   : >> { %1406 = vmax.xlane.f32.xlu1 %v1405_v42 }
 0xc0d   : >> { %1422 = vrot.lane.b32.xlu1 %v1318_v43, %s2878_s16 }
 0xc89   : >> { %v1407_v44 = vpop.xlane.xlu1 %1406 }
 0xc8a   : >> { %v1408_v45 = vmax.f32 %v2845_v28, %v1407_v44  }
 0xc8c   : >> { %v1409_v46 = vsub.f32 %v2845_v28, %v1408_v45  ;;  %v1412_v47 = vsub.f32 %v1404_v38, %v1408_v45  ;;  %v3570_v28 = vmov %v1408_v45 }
 0xc8d   : >> { %v1423_v48 = vpop.permute.xlu1 %1422 }
 0xc8e   : >> { %v1413_v49 = vmul.f32 1.442695, %v1412_v47  ;;  %1970 = vmatpush3.msra.mxu1 %v1423_v48  ;;  %v1410_v52 = vmul.f32 1.442695, %v1409_v46 }
 0xc90   : >> { %2387 = vpow2.f32 %v1413_v49 }
 0xc91   : >> { %2389 = vpow2.f32 %v1410_v52 }
 0xc9a   : >> { %v2388_v50 = vpop.eup %2387 }
 0xc9b   : >> { %1972 = vmatmul.mubr.msk.f32.vlgmr.msra.gmra.mrb[0].mxu1 %vm899_vm4, %v2388_v50  ;;  %v1416_v51 = vsel %vm899_vm4, %v2388_v50, 0.0  ;;  %v2390_v53 = vpop.eup %2389 }
 0xc9c   : >> { %1417 = vadd.xlane.f32.xlu0 %v1416_v51  ;;  %v1415_v54 = vmul.f32 %v2841_v27, %v2390_v53  ;;  %v1420_v57 = vmul.f32 %v2837_v26, %v2390_v53 }
 0xd29   : >> { %v1418_v55 = vpop.xlane.xlu0 %1417 }
 0xd2a   : >> { %v1419_v56 = vadd.f32 %v1418_v55, %v1415_v54  }
 0xd2c   : >> { %v3569_v27 = vmov %v1419_v56  ;;  %v3572_v25 = vmov (%p1307_p11), %v1419_v56 }
 0xd6b   : > { %1310 = sbr.rel (!%p1307_p11) target bundleno = 2732 (0xaac), region = 191 }
 0xd6e   : >> { %v1494_v58 = vpop.f32.mrb[0].mxu1 }
 0xd6f   : >> { %v1498_v59 = vadd.f32 %v1494_v58, %v1420_v57   ;;  %v1973_v60 = vpop.f32.mrb[1].mxu1 }
 0xd71   : >> { %v3568_v26 = vmov %v1498_v59  ;;  %v3571_v24 = vmov (%p1307_p11), %v1498_v59 }
 0xd72 PF: > { %2391 = vrcp.f32 %v2857_v25  ;;  %v1508_v61 = vld [vmem:[#allocation14] sm:$0xff]  ;;  %v1509_v62 = vld [vmem:[#allocation14 + $0x8] sm:$0xff]  ;;  %v1510_v63 = vld [vmem:[#allocation14 + $0x10] sm:$0xff]  ;;  %v2879_v0 = vmov 0.0|0.0   ;;  %vm2880_vm13 = vmmov 0   ;;  %v2881_v3 = vmov 0.0   ;;  %v2857_v25 = vphi %v3381_v25, %v3572_v25   ;;  %v2853_v24 = vphi %v3379_v24, %v3571_v24  }
 0xd73   : > { %2009 = vmatprep.subr.bf16.mxu0 %v2879_v0  ;;  %v2010_v1 = vpack.c.bf16 %v1509_v62, %v1508_v61  ;;  %v1511_v2 = vld [vmem:[#allocation14 + $0x18] sm:$0xff]  ;;  %s3573_s21 = sld [smem:[#allocation22_spill]]  ;;  %1982 = vmatprep.mubr.msk.f32.mxu0 %vm2880_vm13, %v2881_v3  ;;  %s3574_s5 = sld [smem:[#allocation21_spill]]  ;;  %vm1505_vm14 = vcmask 261312   ;;  %vm1519_vm15 = vcmask 261120  }
 0xd74   : > { %v2013_v37 = vpack.c.bf16 %v1511_v2, %v1510_v63  ;;  %s2882_s9 = smov 24   ;;  %s3575_s24 = sld [smem:[#allocation23_spill]] }
 0xd75   : > { %2011 = vmatpush3.bf16.msra.mxu0 %v2010_v1  ;;  %s3576_s15 = sld [smem:[#allocation30_spill]]  ;;  %s1610_s6 = sshll.u32 %s422_s23, 4  ;;  %s3436_s6 = int_to_ptr.vmem [resolvable:$true] %s1610_s6 }
 0xd76   : > { %2012 = vmatprep.subr.bf16.mxu0 %v2879_v0  ;;  %s3577_s20 = sld [smem:[#allocation31_spill]] }
 0xd79   : > { %2014 = vmatpush3.bf16.msra.mxu0 %v2013_v37  ;;  %s1857_s30 = sshll.u32 %s3573_s21, 1  ;;  %s1595_s21 = scalar_lea.sflag [#allocation8], %s420_s2 }
 0xd7a   : > { %s1606_s12 = sadd.s32 %s3574_s5, %s1857_s30  ;;  %s2535_s5 = scalar_lea.vmem %s3436_s6, 128 }
 0xd7b   : > { %v1854_v6 = vld [vmem:[%s3576_s15] ss:$0 sm:$0xff]  ;;  %s1858_s1 = sshll.u32 %s1606_s12, 7  ;;  %p2536_p0 = scmp.ne.s32.totalorder %s3436_s6, %s2535_s5 }
 0xd7c   : > { %v2392_v39 = vpop.eup %2391  ;;  %p3578_p5 = scmp.ne.s32.totalorder %s3575_s24, 0  ;;  %s2883_s30 = smov [#allocation15]  }
 0xd7d   : > { %v1500_v41 = vmul.f32 %v2853_v24, %v2392_v39  ;;  %s2539_s12 = sshll.u32 %s2883_s30, 4  ;;  %s2540_s12 = int_to_ptr.vmem [resolvable:$false] %s2539_s12 }
 0xd7e   : > { %p2537_p8 = pnand %p2536_p0, %p3578_p5  ;;  %s2541_s8 = scalar_lea.vmem %s2540_s12, 256 }
 0xd7f   : > { %1502 = vrot.lane.b32.xlu0 %v1500_v41, %s2882_s9  ;;  %s3434_s9 = scalar_lea.hbm %s3577_s20, %s1858_s1  ;;  %p2542_p2 = scmp.lt.s32.totalorder %s3436_s6, %s2540_s12 }
 0xd80   : > { %p2538_p12 = pneg %p2537_p8  ;;  %p2543_p7 = scmp.lt.s32.totalorder %s2541_s8, %s2535_s5 }
 0xd82   : > { %p2544_p9 = por %p2543_p7, %p2542_p2 }
 0xd84   : > { %p2545_p1 = pnand %p2544_p9, %p2538_p12 }
 0xdf1   : > { %v1503_v4 = vpop.permute.xlu0 %1502 }
 0xdf2   : > { %1506 = vst.msk [vmem:[#allocation5] sm:$0xff] %vm1505_vm14, %v1503_v4 }
 0xdf9   : > { %v1507_v5 = vld [vmem:[#allocation5] sm:$0xff] }
 0xdfa   : > { %1983 = vmatmul.mubr.msk.f32.vlgmr.msra.gmra.mrb[0].mxu0 %vm1519_vm15, %v1507_v5 }
 0xecd   : > { %v1589_v7 = vpop.f32.mrb[0].mxu0 }
 0xece   : > { %v1590_v8 = vadd.f32 %v1854_v6, %v1589_v7  ;;  %v1984_v9 = vpop.f32.mrb[1].mxu0 }
 0xed0   : > { %1593 = vst.msk [vmem:[%s422_s23] sm:$0xff] %vm1519_vm15, %v1590_v8 }
 0xed1   : > { %2548 = shalt.err (!%p2545_p1)
}
 0xed2   : > { %s2549_s2 = scalar_lea.hbm %s3434_s9, 128  ;;  %s2553_s22 = scalar_lea.hbm %s3577_s20, 512 }
 0xed3   : > { %p2550_p3 = scmp.ne.s32.totalorder %s3434_s9, %s2549_s2  ;;  %p2554_p10 = scmp.lt.u32.totalorder %s3434_s9, %s3577_s20 }
 0xed4   : > { %p2555_p13 = scmp.lt.u32.totalorder %s2553_s22, %s2549_s2  ;;  %p2557_p0 = scmp.lt.u32.totalorder %s2549_s2, %s3434_s9 }
 0xed5   : > { %p2551_p4 = pnand %p2550_p3, %p3578_p5 }
 0xed6   : > { %p2556_p11 = por %p2555_p13, %p2554_p10 }
 0xed7   : > { %p2552_p6 = pneg %p2551_p4 }
 0xed8   : > { %p2558_p8 = por %p2557_p0, %p2556_p11 }
 0xeda   : > { %p2559_p12 = pnand %p2558_p8, %p2552_p6 }
 0xedc   : > { %2562 = shalt.err (!%p2559_p12)
}
 0xedd   : > { %2033 = dma.vmem_to_hbm [thread:$0]  (%p3578_p5), %s3436_s6, 128, %s3434_s9, %s1595_s21  }
 0xede PF: > { %s3579_s25 = sld [smem:[#allocation20_spill]]  ;;  %s3580_s16 = sld [smem:[#allocation24_spill]] }
 0xedf   : > { %p2065_p2 = scmp.ge.s32.totalorder %s2761_s19, 2 }
 0xee4   : > { %s1622_s5 = sand.u32 1, %s3579_s25   ;;  %p3581_p7 = scmp.ne.s32.totalorder %s3580_s16, 0 }
 0xee5   : > { %s1623_s30 = scalar_lea.sflag [#allocation8], %s1622_s5 }
 0xee6   : > { %p2053_p9 = pnand %p2065_p2, %p3581_p7 }
 0xee8   : > { %2716 = dma.done.wait (!%p2053_p9), %s1623_s30, 128  }
 0xee9   : > { %2718 = vsyncadd (!%p2053_p9), %s1623_s30, 4294967168  ;;  %s27_s19 = sadd.s32 1, %s2761_s19   ;;  %s3582_s30 = smov %s2725_s10 }
 0xeea   : > { %p24_p1 = scmp.ge.s32.totalorder %s27_s19, 6   ;;  %s3583_s10 = smov %s2729_s11 }
 0xeeb   : > { %s3584_s11 = smov %s3150_s4  ;;  %s3585_s12 = smov %s2737_s13 }
 0xeec   : > { %s3586_s13 = smov %s2741_s14  ;;  %s3587_s14 = smov %s3147_s28 }
 0xeed   : > { %s3588_s15 = smov %s2753_s17  ;;  %s3589_s16 = smov %s2757_s18 }
 0xeee   : > { %s3590_s17 = smov %s3593_s29  ;;  %s3591_s18 = smov %s3597_s27 }
 0xeef   :  { %26 = sbr.rel (!%p24_p1) target bundleno = 19 (0x13), region = 202 }
 0xef6   :  { %1628 = vsyncpa [#allocation7], 1 }
 0xef7   :  { %1630 = vsyncpa [#allocation7 + $0x1], 1 }
 0xef8   :  { %1631 = vsyncpa [#allocation10], 1 }
 0xef9   :  { %1632 = vsyncpa [#allocation13], 1 }
 0xefa   :  { %1633 = vsyncpa [#allocation8], 1 }
 0xefb   :  { %1635 = vsyncpa [#allocation8 + $0x1], 1 }

</bundles_post_ra>
